<compile_context>
chip_gen: v7x
topology: tpu7x:2x2x1
jax: 0.10.0
libtpu: 0.0.40
codegen_flags: <defaults>
</compile_context>

<pallas_src>
import functools

import jax
import jax.numpy as jnp
from jax.experimental import pallas as pl
from jax.experimental.pallas import tpu as pltpu


def _deep_rls_kernel(lam_ref, inv_lam_ref, x_ref, d_ref, y_ref, w_ref, P_scr,
                     *, total_b):
    b = pl.program_id(0)            # batch-tile index   ("parallel")
    tc = pl.program_id(1)           # time-chunk index   ("arbitrary", sequential)
    K, N, Bt = x_ref.shape

    # ------------------------------------------------------------------ init
    # Re-initialize the carried state (w = 0, P = I) at the first time chunk of
    # every batch tile.  P lives entirely in VMEM scratch -> zero HBM traffic.
    @pl.when(tc == 0)
    def _init():
        w_ref[...] = jnp.zeros_like(w_ref)
        P_scr[...] = jnp.zeros_like(P_scr)
        # Diagonal = 1 only on valid (non-padded) batch lanes: padded lanes
        # keep P == 0, so 1/lambda scaling over many steps cannot overflow.
        lane = jax.lax.broadcasted_iota(jnp.int32, (1, Bt), 1)
        diag = jnp.where(b * Bt + lane < total_b,
                         jnp.float32(1.0), jnp.float32(0.0))       # (1, Bt)
        for i in range(N):                         # N tiny (1, Bt) row stores
            P_scr[i, pl.ds(i, 1), :] = diag

    # -------------------------------------------------------------- K steps
    w = w_ref[...]                                 # (N, Bt)  batch on lanes
    P = P_scr[...]                                 # (N, N, Bt)
    t0 = tc * K

    for k in range(K):                             # unrolled in-kernel time loop
        lam = lam_ref[t0 + k]                      # clamp(lambda)  (SMEM scalar)
        inv_lam = inv_lam_ref[t0 + k]              # 1 / lambda     (SMEM scalar)
        x = x_ref[k]                               # (N, Bt)
        d = d_ref[k]                               # (1, Bt)

        # Px[i, b] = sum_j P[i, j, b] * x[j, b]            (== bmm(P_prev, x))
        Px = jnp.sum(P * x[None, :, :], axis=1)                   # (N, Bt)
        denom = lam + jnp.sum(x * Px, axis=0, keepdims=True)      # (1, Bt)
        # exact reciprocal: approx=True error compounds over the recurrence.
        g = Px * pl.reciprocal(denom, approx=False)               # (N, Bt) gain

        y_hat = jnp.sum(w * x, axis=0, keepdims=True)             # (1, Bt)
        err = d - y_hat                                           # (1, Bt)
        w = w + g * err                                           # (N, Bt)

        # P is symmetric, so x^T P == (P x)^T: reuse Px for the rank-1 update.
        #   P_next = (P - g (x^T P)) / lambda
        P = (P - g[:, None, :] * Px[None, :, :]) * inv_lam        # (N, N, Bt)

        y_ref[k] = y_hat

    # Single store per chunk for the carried state.
    w_ref[...] = w
    P_scr[...] = P


def _tpu_vmem_capacity_bytes():
    try:
        return int(pltpu.get_tpu_info().vmem_capacity_bytes)
    except Exception:
        return 64 * 1024 * 1024            # conservative (v7x-sized) fallback


def _plan(num_taps, batch, steps):
    """Pick (B_TILE, K, vmem_limit_bytes) for this TPU generation / problem."""
    cap = _tpu_vmem_capacity_bytes()
    small_vmem = cap < 96 * 1024 * 1024    # v7x: 64 MiB; v5e/v6e: 128 MiB
    scratch_budget = (20 if small_vmem else 64) * 1024 * 1024

    K = max(1, min(8, steps))              # RLS steps per grid iteration
    # fp32 bytes per batch lane: P scratch (+ carried copy), w block, double-
    # buffered x/d/y blocks, and a handful of (N,)/(1,) temporaries.
    per_lane = 4 * (2 * num_taps * num_taps + 6 * num_taps
                    + 2 * K * num_taps + 4 * K + 8)
    if per_lane * 128 > scratch_budget:
        # TODO(synk): tile P over the tap axes in VMEM for large num_taps.
        raise ValueError(
            f"num_taps={num_taps} needs ~{(per_lane * 128) >> 20} MiB of VMEM "
            f"per 128-lane batch tile, exceeding this TPU's scratch budget "
            f"({scratch_budget >> 20} MiB).")

    tile = 128
    for cand in (256, 512, 1024):          # cap at 1024 (vreg / spill pressure)
        if per_lane * cand <= scratch_budget:
            tile = cand

    b_ceil = -(-max(batch, 1) // 128) * 128   # batch rounded up to 128 lanes
    tile = min(tile, b_ceil)                  # never pad past what's needed
    if small_vmem and b_ceil >= 256:
        # v7x has 2 TensorCores per chip: make sure the "parallel" batch axis
        # has >= 2 tiles so both cores get work (but never pad a tiny batch).
        while tile > 128 and b_ceil // tile < 2:
            tile //= 2

    need = per_lane * tile + (1 << 20)
    vmem_limit = int(min(cap * 3 // 4, max(32 * 1024 * 1024, 2 * need)))
    return tile, K, vmem_limit


def deep_rls_forward(x_seq, d_seq, forgetting_factors):
    """Forward pass of DeepRLSNet.

    Args:
      x_seq: (B, S, num_taps) or (S, num_taps) float32
      d_seq: (B, S) or (S,) float32
      forgetting_factors: (T,) per-layer lambda parameters.

    Returns:
      y_hats: (B, steps) RLS outputs at each step (steps = min(T, S))
      w_final: (B, num_taps) final filter weights
    """
    x_seq = jnp.asarray(x_seq, jnp.float32)
    d_seq = jnp.asarray(d_seq, jnp.float32)
    lams = jnp.asarray(forgetting_factors, jnp.float32).reshape(-1)

    if x_seq.ndim == 2:
        x_seq = x_seq[None]
        d_seq = d_seq[None]
    B, S, N = x_seq.shape
    steps = int(min(int(lams.shape[0]), S))
    assert steps >= 1, "need at least one RLS step"

    B_TILE, K, vmem_limit = _plan(N, B, steps)
    Bp = -(-B // B_TILE) * B_TILE
    steps_p = -(-steps // K) * K
    pad_t = steps_p - steps

    # Host-side precompute of clamp(lambda) and 1/lambda.  Padded time steps
    # use lambda = 1 with x = d = 0, which leaves the state untouched and
    # produces y_hat = 0 (sliced off below).
    lam_c = jnp.clip(lams[:steps], 0.0001, 0.9999)
    lam_full = jnp.concatenate([lam_c, jnp.ones((pad_t,), jnp.float32)])
    inv_full = jnp.concatenate([1.0 / lam_c, jnp.ones((pad_t,), jnp.float32)])

    # Batch-on-lanes layout (lane-dense): batch is the minor dim, padded to a
    # multiple of B_TILE lanes.  Padded lanes have x == 0 (and P == 0 at init).
    xT = jnp.transpose(x_seq[:, :steps, :], (1, 2, 0))           # (steps, N, B)
    dT = jnp.transpose(d_seq[:, :steps], (1, 0))[:, None, :]     # (steps, 1, B)
    xT = jnp.pad(xT, ((0, pad_t), (0, 0), (0, Bp - B)))
    dT = jnp.pad(dT, ((0, pad_t), (0, 0), (0, Bp - B)))

    grid = (Bp // B_TILE, steps_p // K)   # (parallel batch tiles, seq. chunks)

    kernel = functools.partial(_deep_rls_kernel, total_b=B)
    y_pad, w_pad = pl.pallas_call(
        kernel,
        out_shape=(
            jax.ShapeDtypeStruct((steps_p, 1, Bp), jnp.float32),   # y_hats
            jax.ShapeDtypeStruct((N, Bp), jnp.float32),            # w_final
        ),
        grid=grid,
        in_specs=[
            pl.BlockSpec(memory_space=pltpu.MemorySpace.SMEM),     # clamp(lambda)
            pl.BlockSpec(memory_space=pltpu.MemorySpace.SMEM),     # 1 / lambda
            pl.BlockSpec((K, N, B_TILE), lambda b, t: (t, 0, b)),  # x chunk
            pl.BlockSpec((K, 1, B_TILE), lambda b, t: (t, 0, b)),  # d chunk
        ],
        out_specs=(
            pl.BlockSpec((K, 1, B_TILE), lambda b, t: (t, 0, b)),  # y chunk
            pl.BlockSpec((N, B_TILE), lambda b, t: (0, b)),        # w (resident)
        ),
        scratch_shapes=[
            pltpu.VMEM((N, N, B_TILE), jnp.float32),               # P state
        ],
        compiler_params=pltpu.CompilerParams(
            dimension_semantics=("parallel", "arbitrary"),
            vmem_limit_bytes=vmem_limit,
        ),
    )(lam_full, inv_full, xT, dT)

    y_hats = jnp.transpose(y_pad[:steps, 0, :B], (1, 0))    # (B, steps)
    w_final = jnp.transpose(w_pad[:, :B], (1, 0))           # (B, N)
    return y_hats, w_final


def _reference(x_seq, d_seq, lams):
    """Pure-JAX step-by-step port of DeepRLSNet.forward, for validation."""
    B, S, N = x_seq.shape
    steps = min(int(lams.shape[0]), S)
    w = jnp.zeros((B, N), jnp.float32)
    P = jnp.broadcast_to(jnp.eye(N, dtype=jnp.float32), (B, N, N))
    ys = []
    for t in range(steps):
        lam = jnp.clip(lams[t], 0.0001, 0.9999)
        x = x_seq[:, t, :]
        d = d_seq[:, t]
        Px = jnp.einsum("bij,bj->bi", P, x)
        denom = lam + jnp.einsum("bi,bi->b", x, Px)
        g = Px / denom[:, None]
        y_hat = jnp.sum(w * x, axis=-1)
        err = d - y_hat
        w = w + g * err[:, None]
        xP = jnp.einsum("bi,bij->bj", x, P)
        P = (P - g[:, :, None] * xP[:, None, :]) / lam
        ys.append(y_hat)
    return jnp.stack(ys, axis=1), w


if __name__ == "__main__":
    num_taps = 8      # filter taps
    seq_len = 12      # sequence length (N in the PyTorch forward)
    T = 12            # unrolled RLS layers; steps = min(T, seq_len)
    batch = 2
    init_lambda = 0.99

    key = jax.random.PRNGKey(0)
    kx, kn = jax.random.split(key)
    x_seq = jax.random.normal(kx, (batch, seq_len, num_taps), dtype=jnp.float32)
    w_true = jnp.linspace(-1.0, 1.0, num_taps, dtype=jnp.float32)
    d_seq = jnp.einsum("bsn,n->bs", x_seq, w_true) \
        + 0.01 * jax.random.normal(kn, (batch, seq_len), dtype=jnp.float32)

    # One forgetting-factor parameter per unrolled layer (all == init_lambda,
    # matching the nn.Parameter initialization of every RLSLayer).
    lams = jnp.full((T,), init_lambda, dtype=jnp.float32)

    y_hats, w_final = deep_rls_forward(x_seq, d_seq, lams)
    jax.block_until_ready((y_hats, w_final))

    # Sanity check against the pure-JAX reference of the PyTorch forward.
    y_ref, w_ref = _reference(x_seq, d_seq, lams)
    assert y_hats.shape == y_ref.shape and w_final.shape == w_ref.shape
    assert jnp.allclose(y_hats, y_ref, atol=1e-3, rtol=1e-3), \
        float(jnp.max(jnp.abs(y_hats - y_ref)))
    assert jnp.allclose(w_final, w_ref, atol=1e-3, rtol=1e-3), \
        float(jnp.max(jnp.abs(w_final - w_ref)))

    print("KERNEL_OK")
</pallas_src>

<mosaic_0001>
module attributes {stable_mosaic.version = 11 : i64} {
  func.func @_deep_rls_kernel(%arg0: i32, %arg1: i32, %arg2: memref<16xf32, #tpu.memory_space<smem>>, %arg3: memref<16xf32, #tpu.memory_space<smem>>, %arg4: memref<8x8x128xf32, #tpu.memory_space<vmem>>, %arg5: memref<8x1x128xf32, #tpu.memory_space<vmem>>, %arg6: memref<8x1x128xf32, #tpu.memory_space<vmem>>, %arg7: memref<8x128xf32, #tpu.memory_space<vmem>>, %arg8: memref<8x8x128xf32, #tpu.memory_space<vmem>>) attributes {dimension_semantics = [#tpu.dimension_semantics<parallel>, #tpu.dimension_semantics<arbitrary>], iteration_bounds = array<i64: 1, 2>, scalar_prefetch = 0 : i64, scratch_operands = 1 : i64, tpu.core_type = #tpu.core_type<tc>, window_params = [{transform_indices = @transform_0, window_bounds = array<i64: 16>}, {transform_indices = @transform_1, window_bounds = array<i64: 16>}, {transform_indices = @transform_2, window_bounds = array<i64: 8, 8, 128>}, {transform_indices = @transform_3, window_bounds = array<i64: 8, 1, 128>}, {transform_indices = @transform_4, window_bounds = array<i64: 8, 1, 128>}, {transform_indices = @transform_5, window_bounds = array<i64: 8, 128>}]} {
    %c0_i32 = arith.constant 0 : i32
    %0 = arith.cmpi eq, %arg1, %c0_i32 : i32
    %1 = arith.extui %0 : i1 to i32
    %c0_i32_0 = arith.constant 0 : i32
    %2 = arith.cmpi ne, %1, %c0_i32_0 : i32
    scf.if %2 {
      %cst_107 = arith.constant 0.000000e+00 : f32
      %328 = vector.broadcast %cst_107 : f32 to vector<8x128xf32>
      %c0_108 = arith.constant 0 : index
      %c0_109 = arith.constant 0 : index
      %329 = vector.load %arg7[%c0_108, %c0_109] : memref<8x128xf32, #tpu.memory_space<vmem>>, vector<8x128xf32>
      tpu.vector_store %arg7[%c0_108, %c0_109], %328 {strides = array<i32>} : memref<8x128xf32, #tpu.memory_space<vmem>>, vector<8x128xf32>,
      %cst_110 = arith.constant 0.000000e+00 : f32
      %330 = vector.broadcast %cst_110 : f32 to vector<8x8x128xf32>
      %c0_111 = arith.constant 0 : index
      %c0_112 = arith.constant 0 : index
      %c0_113 = arith.constant 0 : index
      %331 = vector.load %arg8[%c0_111, %c0_112, %c0_113] : memref<8x8x128xf32, #tpu.memory_space<vmem>>, vector<8x8x128xf32>
      tpu.vector_store %arg8[%c0_111, %c0_112, %c0_113], %330 {strides = array<i32>} : memref<8x8x128xf32, #tpu.memory_space<vmem>>, vector<8x8x128xf32>,
      %332 = tpu.iota {dimensions = array<i32: 1>} : vector<1x128xi32>
      %c128_i32 = arith.constant 128 : i32
      %333 = arith.muli %arg0, %c128_i32 : i32
      %334 = vector.broadcast %333 : i32 to vector<1x128xi32>
      %335 = arith.addi %334, %332 : vector<1x128xi32>
      %c2_i32_114 = arith.constant 2 : i32
      %336 = vector.broadcast %c2_i32_114 : i32 to vector<1x128xi32>
      %337 = arith.cmpi slt, %335, %336 : vector<1x128xi32>
      %cst_115 = arith.constant 1.000000e+00 : f32
      %cst_116 = arith.constant 0.000000e+00 : f32
      %338 = vector.broadcast %cst_115 : f32 to vector<1x128xf32>
      %339 = vector.broadcast %cst_116 : f32 to vector<1x128xf32>
      %340 = arith.select %337, %338, %339 : vector<1x128xi1>, vector<1x128xf32>
      %c0_117 = arith.constant 0 : index
      %c0_118 = arith.constant 0 : index
      %c0_119 = arith.constant 0 : index
      %341 = vector.load %arg8[%c0_117, %c0_118, %c0_119] : memref<8x8x128xf32, #tpu.memory_space<vmem>>, vector<1x1x128xf32>
      %342 = vector.shape_cast %341 : vector<1x1x128xf32> to vector<1x128xf32>
      %343 = vector.shape_cast %340 : vector<1x128xf32> to vector<1x1x128xf32>
      tpu.vector_store %arg8[%c0_117, %c0_118, %c0_119], %343 {strides = array<i32>} : memref<8x8x128xf32, #tpu.memory_space<vmem>>, vector<1x1x128xf32>,
      %c1_120 = arith.constant 1 : index
      %c1_121 = arith.constant 1 : index
      %c0_122 = arith.constant 0 : index
      %344 = vector.load %arg8[%c1_120, %c1_121, %c0_122] : memref<8x8x128xf32, #tpu.memory_space<vmem>>, vector<1x1x128xf32>
      %345 = vector.shape_cast %344 : vector<1x1x128xf32> to vector<1x128xf32>
      %346 = vector.shape_cast %340 : vector<1x128xf32> to vector<1x1x128xf32>
      tpu.vector_store %arg8[%c1_120, %c1_121, %c0_122], %346 {strides = array<i32>} : memref<8x8x128xf32, #tpu.memory_space<vmem>>, vector<1x1x128xf32>,
      %c2_123 = arith.constant 2 : index
      %c2_124 = arith.constant 2 : index
      %c0_125 = arith.constant 0 : index
      %347 = vector.load %arg8[%c2_123, %c2_124, %c0_125] : memref<8x8x128xf32, #tpu.memory_space<vmem>>, vector<1x1x128xf32>
      %348 = vector.shape_cast %347 : vector<1x1x128xf32> to vector<1x128xf32>
      %349 = vector.shape_cast %340 : vector<1x128xf32> to vector<1x1x128xf32>
      tpu.vector_store %arg8[%c2_123, %c2_124, %c0_125], %349 {strides = array<i32>} : memref<8x8x128xf32, #tpu.memory_space<vmem>>, vector<1x1x128xf32>,
      %c3_126 = arith.constant 3 : index
      %c3_127 = arith.constant 3 : index
      %c0_128 = arith.constant 0 : index
      %350 = vector.load %arg8[%c3_126, %c3_127, %c0_128] : memref<8x8x128xf32, #tpu.memory_space<vmem>>, vector<1x1x128xf32>
      %351 = vector.shape_cast %350 : vector<1x1x128xf32> to vector<1x128xf32>
      %352 = vector.shape_cast %340 : vector<1x128xf32> to vector<1x1x128xf32>
      tpu.vector_store %arg8[%c3_126, %c3_127, %c0_128], %352 {strides = array<i32>} : memref<8x8x128xf32, #tpu.memory_space<vmem>>, vector<1x1x128xf32>,
      %c4_129 = arith.constant 4 : index
      %c4_130 = arith.constant 4 : index
      %c0_131 = arith.constant 0 : index
      %353 = vector.load %arg8[%c4_129, %c4_130, %c0_131] : memref<8x8x128xf32, #tpu.memory_space<vmem>>, vector<1x1x128xf32>
      %354 = vector.shape_cast %353 : vector<1x1x128xf32> to vector<1x128xf32>
      %355 = vector.shape_cast %340 : vector<1x128xf32> to vector<1x1x128xf32>
      tpu.vector_store %arg8[%c4_129, %c4_130, %c0_131], %355 {strides = array<i32>} : memref<8x8x128xf32, #tpu.memory_space<vmem>>, vector<1x1x128xf32>,
      %c5_132 = arith.constant 5 : index
      %c5_133 = arith.constant 5 : index
      %c0_134 = arith.constant 0 : index
      %356 = vector.load %arg8[%c5_132, %c5_133, %c0_134] : memref<8x8x128xf32, #tpu.memory_space<vmem>>, vector<1x1x128xf32>
      %357 = vector.shape_cast %356 : vector<1x1x128xf32> to vector<1x128xf32>
      %358 = vector.shape_cast %340 : vector<1x128xf32> to vector<1x1x128xf32>
      tpu.vector_store %arg8[%c5_132, %c5_133, %c0_134], %358 {strides = array<i32>} : memref<8x8x128xf32, #tpu.memory_space<vmem>>, vector<1x1x128xf32>,
      %c6_135 = arith.constant 6 : index
      %c6_136 = arith.constant 6 : index
      %c0_137 = arith.constant 0 : index
      %359 = vector.load %arg8[%c6_135, %c6_136, %c0_137] : memref<8x8x128xf32, #tpu.memory_space<vmem>>, vector<1x1x128xf32>
      %360 = vector.shape_cast %359 : vector<1x1x128xf32> to vector<1x128xf32>
      %361 = vector.shape_cast %340 : vector<1x128xf32> to vector<1x1x128xf32>
      tpu.vector_store %arg8[%c6_135, %c6_136, %c0_137], %361 {strides = array<i32>} : memref<8x8x128xf32, #tpu.memory_space<vmem>>, vector<1x1x128xf32>,
      %c7_138 = arith.constant 7 : index
      %c7_139 = arith.constant 7 : index
      %c0_140 = arith.constant 0 : index
      %362 = vector.load %arg8[%c7_138, %c7_139, %c0_140] : memref<8x8x128xf32, #tpu.memory_space<vmem>>, vector<1x1x128xf32>
      %363 = vector.shape_cast %362 : vector<1x1x128xf32> to vector<1x128xf32>
      %364 = vector.shape_cast %340 : vector<1x128xf32> to vector<1x1x128xf32>
      tpu.vector_store %arg8[%c7_138, %c7_139, %c0_140], %364 {strides = array<i32>} : memref<8x8x128xf32, #tpu.memory_space<vmem>>, vector<1x1x128xf32>,
    } else {
    }
    %c0 = arith.constant 0 : index
    %c0_1 = arith.constant 0 : index
    %3 = vector.load %arg7[%c0, %c0_1] : memref<8x128xf32, #tpu.memory_space<vmem>>, vector<8x128xf32>
    %c0_2 = arith.constant 0 : index
    %c0_3 = arith.constant 0 : index
    %c0_4 = arith.constant 0 : index
    %4 = vector.load %arg8[%c0_2, %c0_3, %c0_4] : memref<8x8x128xf32, #tpu.memory_space<vmem>>, vector<8x8x128xf32>
    %c8_i32 = arith.constant 8 : i32
    %5 = arith.muli %arg1, %c8_i32 : i32
    %c0_i32_5 = arith.constant 0 : i32
    %6 = arith.addi %5, %c0_i32_5 : i32
    %7 = arith.index_cast %6 : i32 to index
    %8 = memref.load %arg2[%7] : memref<16xf32, #tpu.memory_space<smem>>
    %c0_i32_6 = arith.constant 0 : i32
    %9 = arith.addi %5, %c0_i32_6 : i32
    %10 = arith.index_cast %9 : i32 to index
    %11 = memref.load %arg3[%10] : memref<16xf32, #tpu.memory_space<smem>>
    %c0_7 = arith.constant 0 : index
    %c0_8 = arith.constant 0 : index
    %c0_9 = arith.constant 0 : index
    %12 = vector.load %arg4[%c0_7, %c0_8, %c0_9] : memref<8x8x128xf32, #tpu.memory_space<vmem>>, vector<1x8x128xf32>
    %13 = vector.shape_cast %12 : vector<1x8x128xf32> to vector<8x128xf32>
    %c0_10 = arith.constant 0 : index
    %c0_11 = arith.constant 0 : index
    %c0_12 = arith.constant 0 : index
    %14 = vector.load %arg5[%c0_10, %c0_11, %c0_12] : memref<8x1x128xf32, #tpu.memory_space<vmem>>, vector<1x1x128xf32>
    %15 = vector.shape_cast %14 : vector<1x1x128xf32> to vector<1x128xf32>
    %16 = vector.shape_cast %13 : vector<8x128xf32> to vector<1x8x128xf32>
    %17 = vector.broadcast %16 : vector<1x8x128xf32> to vector<8x8x128xf32>
    %18 = arith.mulf %4, %17 : vector<8x8x128xf32>
    %cst = arith.constant dense<0.000000e+00> : vector<8x128xf32>
    %19 = vector.multi_reduction <add>, %18, %cst [1] : vector<8x8x128xf32> to vector<8x128xf32>
    %20 = arith.mulf %13, %19 : vector<8x128xf32>
    %cst_13 = arith.constant dense<0.000000e+00> : vector<128xf32>
    %21 = vector.multi_reduction <add>, %20, %cst_13 [0] : vector<8x128xf32> to vector<128xf32>
    %22 = vector.shape_cast %21 : vector<128xf32> to vector<1x128xf32>
    %23 = vector.broadcast %8 : f32 to vector<1x128xf32>
    %24 = arith.addf %23, %22 : vector<1x128xf32>
    %25 = tpu.reciprocal %24 : vector<1x128xf32> -> vector<1x128xf32>
    %26 = vector.broadcast %25 : vector<1x128xf32> to vector<8x128xf32>
    %27 = arith.mulf %19, %26 : vector<8x128xf32>
    %28 = arith.mulf %3, %13 : vector<8x128xf32>
    %cst_14 = arith.constant dense<0.000000e+00> : vector<128xf32>
    %29 = vector.multi_reduction <add>, %28, %cst_14 [0] : vector<8x128xf32> to vector<128xf32>
    %30 = vector.shape_cast %29 : vector<128xf32> to vector<1x128xf32>
    %31 = arith.subf %15, %30 : vector<1x128xf32>
    %32 = vector.broadcast %31 : vector<1x128xf32> to vector<8x128xf32>
    %33 = arith.mulf %27, %32 : vector<8x128xf32>
    %34 = arith.addf %3, %33 : vector<8x128xf32>
    %35 = vector.shape_cast %27 : vector<8x128xf32> to vector<8x1x128xf32>
    %36 = vector.shape_cast %19 : vector<8x128xf32> to vector<1x8x128xf32>
    %37 = vector.broadcast %35 : vector<8x1x128xf32> to vector<8x8x128xf32>
    %38 = vector.broadcast %36 : vector<1x8x128xf32> to vector<8x8x128xf32>
    %39 = arith.mulf %37, %38 : vector<8x8x128xf32>
    %40 = arith.subf %4, %39 : vector<8x8x128xf32>
    %41 = vector.broadcast %11 : f32 to vector<8x8x128xf32>
    %42 = arith.mulf %40, %41 : vector<8x8x128xf32>
    %c0_15 = arith.constant 0 : index
    %c0_16 = arith.constant 0 : index
    %c0_17 = arith.constant 0 : index
    %43 = vector.load %arg6[%c0_15, %c0_16, %c0_17] : memref<8x1x128xf32, #tpu.memory_space<vmem>>, vector<1x1x128xf32>
    %44 = vector.shape_cast %43 : vector<1x1x128xf32> to vector<1x128xf32>
    %45 = vector.shape_cast %30 : vector<1x128xf32> to vector<1x1x128xf32>
    tpu.vector_store %arg6[%c0_15, %c0_16, %c0_17], %45 {strides = array<i32>} : memref<8x1x128xf32, #tpu.memory_space<vmem>>, vector<1x1x128xf32>,
    %c1_i32 = arith.constant 1 : i32
    %46 = arith.addi %5, %c1_i32 : i32
    %47 = arith.index_cast %46 : i32 to index
    %48 = memref.load %arg2[%47] : memref<16xf32, #tpu.memory_space<smem>>
    %c1_i32_18 = arith.constant 1 : i32
    %49 = arith.addi %5, %c1_i32_18 : i32
    %50 = arith.index_cast %49 : i32 to index
    %51 = memref.load %arg3[%50] : memref<16xf32, #tpu.memory_space<smem>>
    %c1 = arith.constant 1 : index
    %c0_19 = arith.constant 0 : index
    %c0_20 = arith.constant 0 : index
    %52 = vector.load %arg4[%c1, %c0_19, %c0_20] : memref<8x8x128xf32, #tpu.memory_space<vmem>>, vector<1x8x128xf32>
    %53 = vector.shape_cast %52 : vector<1x8x128xf32> to vector<8x128xf32>
    %c1_21 = arith.constant 1 : index
    %c0_22 = arith.constant 0 : index
    %c0_23 = arith.constant 0 : index
    %54 = vector.load %arg5[%c1_21, %c0_22, %c0_23] : memref<8x1x128xf32, #tpu.memory_space<vmem>>, vector<1x1x128xf32>
    %55 = vector.shape_cast %54 : vector<1x1x128xf32> to vector<1x128xf32>
    %56 = vector.shape_cast %53 : vector<8x128xf32> to vector<1x8x128xf32>
    %57 = vector.broadcast %56 : vector<1x8x128xf32> to vector<8x8x128xf32>
    %58 = arith.mulf %42, %57 : vector<8x8x128xf32>
    %cst_24 = arith.constant dense<0.000000e+00> : vector<8x128xf32>
    %59 = vector.multi_reduction <add>, %58, %cst_24 [1] : vector<8x8x128xf32> to vector<8x128xf32>
    %60 = arith.mulf %53, %59 : vector<8x128xf32>
    %cst_25 = arith.constant dense<0.000000e+00> : vector<128xf32>
    %61 = vector.multi_reduction <add>, %60, %cst_25 [0] : vector<8x128xf32> to vector<128xf32>
    %62 = vector.shape_cast %61 : vector<128xf32> to vector<1x128xf32>
    %63 = vector.broadcast %48 : f32 to vector<1x128xf32>
    %64 = arith.addf %63, %62 : vector<1x128xf32>
    %65 = tpu.reciprocal %64 : vector<1x128xf32> -> vector<1x128xf32>
    %66 = vector.broadcast %65 : vector<1x128xf32> to vector<8x128xf32>
    %67 = arith.mulf %59, %66 : vector<8x128xf32>
    %68 = arith.mulf %34, %53 : vector<8x128xf32>
    %cst_26 = arith.constant dense<0.000000e+00> : vector<128xf32>
    %69 = vector.multi_reduction <add>, %68, %cst_26 [0] : vector<8x128xf32> to vector<128xf32>
    %70 = vector.shape_cast %69 : vector<128xf32> to vector<1x128xf32>
    %71 = arith.subf %55, %70 : vector<1x128xf32>
    %72 = vector.broadcast %71 : vector<1x128xf32> to vector<8x128xf32>
    %73 = arith.mulf %67, %72 : vector<8x128xf32>
    %74 = arith.addf %34, %73 : vector<8x128xf32>
    %75 = vector.shape_cast %67 : vector<8x128xf32> to vector<8x1x128xf32>
    %76 = vector.shape_cast %59 : vector<8x128xf32> to vector<1x8x128xf32>
    %77 = vector.broadcast %75 : vector<8x1x128xf32> to vector<8x8x128xf32>
    %78 = vector.broadcast %76 : vector<1x8x128xf32> to vector<8x8x128xf32>
    %79 = arith.mulf %77, %78 : vector<8x8x128xf32>
    %80 = arith.subf %42, %79 : vector<8x8x128xf32>
    %81 = vector.broadcast %51 : f32 to vector<8x8x128xf32>
    %82 = arith.mulf %80, %81 : vector<8x8x128xf32>
    %c1_27 = arith.constant 1 : index
    %c0_28 = arith.constant 0 : index
    %c0_29 = arith.constant 0 : index
    %83 = vector.load %arg6[%c1_27, %c0_28, %c0_29] : memref<8x1x128xf32, #tpu.memory_space<vmem>>, vector<1x1x128xf32>
    %84 = vector.shape_cast %83 : vector<1x1x128xf32> to vector<1x128xf32>
    %85 = vector.shape_cast %70 : vector<1x128xf32> to vector<1x1x128xf32>
    tpu.vector_store %arg6[%c1_27, %c0_28, %c0_29], %85 {strides = array<i32>} : memref<8x1x128xf32, #tpu.memory_space<vmem>>, vector<1x1x128xf32>,
    %c2_i32 = arith.constant 2 : i32
    %86 = arith.addi %5, %c2_i32 : i32
    %87 = arith.index_cast %86 : i32 to index
    %88 = memref.load %arg2[%87] : memref<16xf32, #tpu.memory_space<smem>>
    %c2_i32_30 = arith.constant 2 : i32
    %89 = arith.addi %5, %c2_i32_30 : i32
    %90 = arith.index_cast %89 : i32 to index
    %91 = memref.load %arg3[%90] : memref<16xf32, #tpu.memory_space<smem>>
    %c2 = arith.constant 2 : index
    %c0_31 = arith.constant 0 : index
    %c0_32 = arith.constant 0 : index
    %92 = vector.load %arg4[%c2, %c0_31, %c0_32] : memref<8x8x128xf32, #tpu.memory_space<vmem>>, vector<1x8x128xf32>
    %93 = vector.shape_cast %92 : vector<1x8x128xf32> to vector<8x128xf32>
    %c2_33 = arith.constant 2 : index
    %c0_34 = arith.constant 0 : index
    %c0_35 = arith.constant 0 : index
    %94 = vector.load %arg5[%c2_33, %c0_34, %c0_35] : memref<8x1x128xf32, #tpu.memory_space<vmem>>, vector<1x1x128xf32>
    %95 = vector.shape_cast %94 : vector<1x1x128xf32> to vector<1x128xf32>
    %96 = vector.shape_cast %93 : vector<8x128xf32> to vector<1x8x128xf32>
    %97 = vector.broadcast %96 : vector<1x8x128xf32> to vector<8x8x128xf32>
    %98 = arith.mulf %82, %97 : vector<8x8x128xf32>
    %cst_36 = arith.constant dense<0.000000e+00> : vector<8x128xf32>
    %99 = vector.multi_reduction <add>, %98, %cst_36 [1] : vector<8x8x128xf32> to vector<8x128xf32>
    %100 = arith.mulf %93, %99 : vector<8x128xf32>
    %cst_37 = arith.constant dense<0.000000e+00> : vector<128xf32>
    %101 = vector.multi_reduction <add>, %100, %cst_37 [0] : vector<8x128xf32> to vector<128xf32>
    %102 = vector.shape_cast %101 : vector<128xf32> to vector<1x128xf32>
    %103 = vector.broadcast %88 : f32 to vector<1x128xf32>
    %104 = arith.addf %103, %102 : vector<1x128xf32>
    %105 = tpu.reciprocal %104 : vector<1x128xf32> -> vector<1x128xf32>
    %106 = vector.broadcast %105 : vector<1x128xf32> to vector<8x128xf32>
    %107 = arith.mulf %99, %106 : vector<8x128xf32>
    %108 = arith.mulf %74, %93 : vector<8x128xf32>
    %cst_38 = arith.constant dense<0.000000e+00> : vector<128xf32>
    %109 = vector.multi_reduction <add>, %108, %cst_38 [0] : vector<8x128xf32> to vector<128xf32>
    %110 = vector.shape_cast %109 : vector<128xf32> to vector<1x128xf32>
    %111 = arith.subf %95, %110 : vector<1x128xf32>
    %112 = vector.broadcast %111 : vector<1x128xf32> to vector<8x128xf32>
    %113 = arith.mulf %107, %112 : vector<8x128xf32>
    %114 = arith.addf %74, %113 : vector<8x128xf32>
    %115 = vector.shape_cast %107 : vector<8x128xf32> to vector<8x1x128xf32>
    %116 = vector.shape_cast %99 : vector<8x128xf32> to vector<1x8x128xf32>
    %117 = vector.broadcast %115 : vector<8x1x128xf32> to vector<8x8x128xf32>
    %118 = vector.broadcast %116 : vector<1x8x128xf32> to vector<8x8x128xf32>
    %119 = arith.mulf %117, %118 : vector<8x8x128xf32>
    %120 = arith.subf %82, %119 : vector<8x8x128xf32>
    %121 = vector.broadcast %91 : f32 to vector<8x8x128xf32>
    %122 = arith.mulf %120, %121 : vector<8x8x128xf32>
    %c2_39 = arith.constant 2 : index
    %c0_40 = arith.constant 0 : index
    %c0_41 = arith.constant 0 : index
    %123 = vector.load %arg6[%c2_39, %c0_40, %c0_41] : memref<8x1x128xf32, #tpu.memory_space<vmem>>, vector<1x1x128xf32>
    %124 = vector.shape_cast %123 : vector<1x1x128xf32> to vector<1x128xf32>
    %125 = vector.shape_cast %110 : vector<1x128xf32> to vector<1x1x128xf32>
    tpu.vector_store %arg6[%c2_39, %c0_40, %c0_41], %125 {strides = array<i32>} : memref<8x1x128xf32, #tpu.memory_space<vmem>>, vector<1x1x128xf32>,
    %c3_i32 = arith.constant 3 : i32
    %126 = arith.addi %5, %c3_i32 : i32
    %127 = arith.index_cast %126 : i32 to index
    %128 = memref.load %arg2[%127] : memref<16xf32, #tpu.memory_space<smem>>
    %c3_i32_42 = arith.constant 3 : i32
    %129 = arith.addi %5, %c3_i32_42 : i32
    %130 = arith.index_cast %129 : i32 to index
    %131 = memref.load %arg3[%130] : memref<16xf32, #tpu.memory_space<smem>>
    %c3 = arith.constant 3 : index
    %c0_43 = arith.constant 0 : index
    %c0_44 = arith.constant 0 : index
    %132 = vector.load %arg4[%c3, %c0_43, %c0_44] : memref<8x8x128xf32, #tpu.memory_space<vmem>>, vector<1x8x128xf32>
    %133 = vector.shape_cast %132 : vector<1x8x128xf32> to vector<8x128xf32>
    %c3_45 = arith.constant 3 : index
    %c0_46 = arith.constant 0 : index
    %c0_47 = arith.constant 0 : index
    %134 = vector.load %arg5[%c3_45, %c0_46, %c0_47] : memref<8x1x128xf32, #tpu.memory_space<vmem>>, vector<1x1x128xf32>
    %135 = vector.shape_cast %134 : vector<1x1x128xf32> to vector<1x128xf32>
    %136 = vector.shape_cast %133 : vector<8x128xf32> to vector<1x8x128xf32>
    %137 = vector.broadcast %136 : vector<1x8x128xf32> to vector<8x8x128xf32>
    %138 = arith.mulf %122, %137 : vector<8x8x128xf32>
    %cst_48 = arith.constant dense<0.000000e+00> : vector<8x128xf32>
    %139 = vector.multi_reduction <add>, %138, %cst_48 [1] : vector<8x8x128xf32> to vector<8x128xf32>
    %140 = arith.mulf %133, %139 : vector<8x128xf32>
    %cst_49 = arith.constant dense<0.000000e+00> : vector<128xf32>
    %141 = vector.multi_reduction <add>, %140, %cst_49 [0] : vector<8x128xf32> to vector<128xf32>
    %142 = vector.shape_cast %141 : vector<128xf32> to vector<1x128xf32>
    %143 = vector.broadcast %128 : f32 to vector<1x128xf32>
    %144 = arith.addf %143, %142 : vector<1x128xf32>
    %145 = tpu.reciprocal %144 : vector<1x128xf32> -> vector<1x128xf32>
    %146 = vector.broadcast %145 : vector<1x128xf32> to vector<8x128xf32>
    %147 = arith.mulf %139, %146 : vector<8x128xf32>
    %148 = arith.mulf %114, %133 : vector<8x128xf32>
    %cst_50 = arith.constant dense<0.000000e+00> : vector<128xf32>
    %149 = vector.multi_reduction <add>, %148, %cst_50 [0] : vector<8x128xf32> to vector<128xf32>
    %150 = vector.shape_cast %149 : vector<128xf32> to vector<1x128xf32>
    %151 = arith.subf %135, %150 : vector<1x128xf32>
    %152 = vector.broadcast %151 : vector<1x128xf32> to vector<8x128xf32>
    %153 = arith.mulf %147, %152 : vector<8x128xf32>
    %154 = arith.addf %114, %153 : vector<8x128xf32>
    %155 = vector.shape_cast %147 : vector<8x128xf32> to vector<8x1x128xf32>
    %156 = vector.shape_cast %139 : vector<8x128xf32> to vector<1x8x128xf32>
    %157 = vector.broadcast %155 : vector<8x1x128xf32> to vector<8x8x128xf32>
    %158 = vector.broadcast %156 : vector<1x8x128xf32> to vector<8x8x128xf32>
    %159 = arith.mulf %157, %158 : vector<8x8x128xf32>
    %160 = arith.subf %122, %159 : vector<8x8x128xf32>
    %161 = vector.broadcast %131 : f32 to vector<8x8x128xf32>
    %162 = arith.mulf %160, %161 : vector<8x8x128xf32>
    %c3_51 = arith.constant 3 : index
    %c0_52 = arith.constant 0 : index
    %c0_53 = arith.constant 0 : index
    %163 = vector.load %arg6[%c3_51, %c0_52, %c0_53] : memref<8x1x128xf32, #tpu.memory_space<vmem>>, vector<1x1x128xf32>
    %164 = vector.shape_cast %163 : vector<1x1x128xf32> to vector<1x128xf32>
    %165 = vector.shape_cast %150 : vector<1x128xf32> to vector<1x1x128xf32>
    tpu.vector_store %arg6[%c3_51, %c0_52, %c0_53], %165 {strides = array<i32>} : memref<8x1x128xf32, #tpu.memory_space<vmem>>, vector<1x1x128xf32>,
    %c4_i32 = arith.constant 4 : i32
    %166 = arith.addi %5, %c4_i32 : i32
    %167 = arith.index_cast %166 : i32 to index
    %168 = memref.load %arg2[%167] : memref<16xf32, #tpu.memory_space<smem>>
    %c4_i32_54 = arith.constant 4 : i32
    %169 = arith.addi %5, %c4_i32_54 : i32
    %170 = arith.index_cast %169 : i32 to index
    %171 = memref.load %arg3[%170] : memref<16xf32, #tpu.memory_space<smem>>
    %c4 = arith.constant 4 : index
    %c0_55 = arith.constant 0 : index
    %c0_56 = arith.constant 0 : index
    %172 = vector.load %arg4[%c4, %c0_55, %c0_56] : memref<8x8x128xf32, #tpu.memory_space<vmem>>, vector<1x8x128xf32>
    %173 = vector.shape_cast %172 : vector<1x8x128xf32> to vector<8x128xf32>
    %c4_57 = arith.constant 4 : index
    %c0_58 = arith.constant 0 : index
    %c0_59 = arith.constant 0 : index
    %174 = vector.load %arg5[%c4_57, %c0_58, %c0_59] : memref<8x1x128xf32, #tpu.memory_space<vmem>>, vector<1x1x128xf32>
    %175 = vector.shape_cast %174 : vector<1x1x128xf32> to vector<1x128xf32>
    %176 = vector.shape_cast %173 : vector<8x128xf32> to vector<1x8x128xf32>
    %177 = vector.broadcast %176 : vector<1x8x128xf32> to vector<8x8x128xf32>
    %178 = arith.mulf %162, %177 : vector<8x8x128xf32>
    %cst_60 = arith.constant dense<0.000000e+00> : vector<8x128xf32>
    %179 = vector.multi_reduction <add>, %178, %cst_60 [1] : vector<8x8x128xf32> to vector<8x128xf32>
    %180 = arith.mulf %173, %179 : vector<8x128xf32>
    %cst_61 = arith.constant dense<0.000000e+00> : vector<128xf32>
    %181 = vector.multi_reduction <add>, %180, %cst_61 [0] : vector<8x128xf32> to vector<128xf32>
    %182 = vector.shape_cast %181 : vector<128xf32> to vector<1x128xf32>
    %183 = vector.broadcast %168 : f32 to vector<1x128xf32>
    %184 = arith.addf %183, %182 : vector<1x128xf32>
    %185 = tpu.reciprocal %184 : vector<1x128xf32> -> vector<1x128xf32>
    %186 = vector.broadcast %185 : vector<1x128xf32> to vector<8x128xf32>
    %187 = arith.mulf %179, %186 : vector<8x128xf32>
    %188 = arith.mulf %154, %173 : vector<8x128xf32>
    %cst_62 = arith.constant dense<0.000000e+00> : vector<128xf32>
    %189 = vector.multi_reduction <add>, %188, %cst_62 [0] : vector<8x128xf32> to vector<128xf32>
    %190 = vector.shape_cast %189 : vector<128xf32> to vector<1x128xf32>
    %191 = arith.subf %175, %190 : vector<1x128xf32>
    %192 = vector.broadcast %191 : vector<1x128xf32> to vector<8x128xf32>
    %193 = arith.mulf %187, %192 : vector<8x128xf32>
    %194 = arith.addf %154, %193 : vector<8x128xf32>
    %195 = vector.shape_cast %187 : vector<8x128xf32> to vector<8x1x128xf32>
    %196 = vector.shape_cast %179 : vector<8x128xf32> to vector<1x8x128xf32>
    %197 = vector.broadcast %195 : vector<8x1x128xf32> to vector<8x8x128xf32>
    %198 = vector.broadcast %196 : vector<1x8x128xf32> to vector<8x8x128xf32>
    %199 = arith.mulf %197, %198 : vector<8x8x128xf32>
    %200 = arith.subf %162, %199 : vector<8x8x128xf32>
    %201 = vector.broadcast %171 : f32 to vector<8x8x128xf32>
    %202 = arith.mulf %200, %201 : vector<8x8x128xf32>
    %c4_63 = arith.constant 4 : index
    %c0_64 = arith.constant 0 : index
    %c0_65 = arith.constant 0 : index
    %203 = vector.load %arg6[%c4_63, %c0_64, %c0_65] : memref<8x1x128xf32, #tpu.memory_space<vmem>>, vector<1x1x128xf32>
    %204 = vector.shape_cast %203 : vector<1x1x128xf32> to vector<1x128xf32>
    %205 = vector.shape_cast %190 : vector<1x128xf32> to vector<1x1x128xf32>
    tpu.vector_store %arg6[%c4_63, %c0_64, %c0_65], %205 {strides = array<i32>} : memref<8x1x128xf32, #tpu.memory_space<vmem>>, vector<1x1x128xf32>,
    %c5_i32 = arith.constant 5 : i32
    %206 = arith.addi %5, %c5_i32 : i32
    %207 = arith.index_cast %206 : i32 to index
    %208 = memref.load %arg2[%207] : memref<16xf32, #tpu.memory_space<smem>>
    %c5_i32_66 = arith.constant 5 : i32
    %209 = arith.addi %5, %c5_i32_66 : i32
    %210 = arith.index_cast %209 : i32 to index
    %211 = memref.load %arg3[%210] : memref<16xf32, #tpu.memory_space<smem>>
    %c5 = arith.constant 5 : index
    %c0_67 = arith.constant 0 : index
    %c0_68 = arith.constant 0 : index
    %212 = vector.load %arg4[%c5, %c0_67, %c0_68] : memref<8x8x128xf32, #tpu.memory_space<vmem>>, vector<1x8x128xf32>
    %213 = vector.shape_cast %212 : vector<1x8x128xf32> to vector<8x128xf32>
    %c5_69 = arith.constant 5 : index
    %c0_70 = arith.constant 0 : index
    %c0_71 = arith.constant 0 : index
    %214 = vector.load %arg5[%c5_69, %c0_70, %c0_71] : memref<8x1x128xf32, #tpu.memory_space<vmem>>, vector<1x1x128xf32>
    %215 = vector.shape_cast %214 : vector<1x1x128xf32> to vector<1x128xf32>
    %216 = vector.shape_cast %213 : vector<8x128xf32> to vector<1x8x128xf32>
    %217 = vector.broadcast %216 : vector<1x8x128xf32> to vector<8x8x128xf32>
    %218 = arith.mulf %202, %217 : vector<8x8x128xf32>
    %cst_72 = arith.constant dense<0.000000e+00> : vector<8x128xf32>
    %219 = vector.multi_reduction <add>, %218, %cst_72 [1] : vector<8x8x128xf32> to vector<8x128xf32>
    %220 = arith.mulf %213, %219 : vector<8x128xf32>
    %cst_73 = arith.constant dense<0.000000e+00> : vector<128xf32>
    %221 = vector.multi_reduction <add>, %220, %cst_73 [0] : vector<8x128xf32> to vector<128xf32>
    %222 = vector.shape_cast %221 : vector<128xf32> to vector<1x128xf32>
    %223 = vector.broadcast %208 : f32 to vector<1x128xf32>
    %224 = arith.addf %223, %222 : vector<1x128xf32>
    %225 = tpu.reciprocal %224 : vector<1x128xf32> -> vector<1x128xf32>
    %226 = vector.broadcast %225 : vector<1x128xf32> to vector<8x128xf32>
    %227 = arith.mulf %219, %226 : vector<8x128xf32>
    %228 = arith.mulf %194, %213 : vector<8x128xf32>
    %cst_74 = arith.constant dense<0.000000e+00> : vector<128xf32>
    %229 = vector.multi_reduction <add>, %228, %cst_74 [0] : vector<8x128xf32> to vector<128xf32>
    %230 = vector.shape_cast %229 : vector<128xf32> to vector<1x128xf32>
    %231 = arith.subf %215, %230 : vector<1x128xf32>
    %232 = vector.broadcast %231 : vector<1x128xf32> to vector<8x128xf32>
    %233 = arith.mulf %227, %232 : vector<8x128xf32>
    %234 = arith.addf %194, %233 : vector<8x128xf32>
    %235 = vector.shape_cast %227 : vector<8x128xf32> to vector<8x1x128xf32>
    %236 = vector.shape_cast %219 : vector<8x128xf32> to vector<1x8x128xf32>
    %237 = vector.broadcast %235 : vector<8x1x128xf32> to vector<8x8x128xf32>
    %238 = vector.broadcast %236 : vector<1x8x128xf32> to vector<8x8x128xf32>
    %239 = arith.mulf %237, %238 : vector<8x8x128xf32>
    %240 = arith.subf %202, %239 : vector<8x8x128xf32>
    %241 = vector.broadcast %211 : f32 to vector<8x8x128xf32>
    %242 = arith.mulf %240, %241 : vector<8x8x128xf32>
    %c5_75 = arith.constant 5 : index
    %c0_76 = arith.constant 0 : index
    %c0_77 = arith.constant 0 : index
    %243 = vector.load %arg6[%c5_75, %c0_76, %c0_77] : memref<8x1x128xf32, #tpu.memory_space<vmem>>, vector<1x1x128xf32>
    %244 = vector.shape_cast %243 : vector<1x1x128xf32> to vector<1x128xf32>
    %245 = vector.shape_cast %230 : vector<1x128xf32> to vector<1x1x128xf32>
    tpu.vector_store %arg6[%c5_75, %c0_76, %c0_77], %245 {strides = array<i32>} : memref<8x1x128xf32, #tpu.memory_space<vmem>>, vector<1x1x128xf32>,
    %c6_i32 = arith.constant 6 : i32
    %246 = arith.addi %5, %c6_i32 : i32
    %247 = arith.index_cast %246 : i32 to index
    %248 = memref.load %arg2[%247] : memref<16xf32, #tpu.memory_space<smem>>
    %c6_i32_78 = arith.constant 6 : i32
    %249 = arith.addi %5, %c6_i32_78 : i32
    %250 = arith.index_cast %249 : i32 to index
    %251 = memref.load %arg3[%250] : memref<16xf32, #tpu.memory_space<smem>>
    %c6 = arith.constant 6 : index
    %c0_79 = arith.constant 0 : index
    %c0_80 = arith.constant 0 : index
    %252 = vector.load %arg4[%c6, %c0_79, %c0_80] : memref<8x8x128xf32, #tpu.memory_space<vmem>>, vector<1x8x128xf32>
    %253 = vector.shape_cast %252 : vector<1x8x128xf32> to vector<8x128xf32>
    %c6_81 = arith.constant 6 : index
    %c0_82 = arith.constant 0 : index
    %c0_83 = arith.constant 0 : index
    %254 = vector.load %arg5[%c6_81, %c0_82, %c0_83] : memref<8x1x128xf32, #tpu.memory_space<vmem>>, vector<1x1x128xf32>
    %255 = vector.shape_cast %254 : vector<1x1x128xf32> to vector<1x128xf32>
    %256 = vector.shape_cast %253 : vector<8x128xf32> to vector<1x8x128xf32>
    %257 = vector.broadcast %256 : vector<1x8x128xf32> to vector<8x8x128xf32>
    %258 = arith.mulf %242, %257 : vector<8x8x128xf32>
    %cst_84 = arith.constant dense<0.000000e+00> : vector<8x128xf32>
    %259 = vector.multi_reduction <add>, %258, %cst_84 [1] : vector<8x8x128xf32> to vector<8x128xf32>
    %260 = arith.mulf %253, %259 : vector<8x128xf32>
    %cst_85 = arith.constant dense<0.000000e+00> : vector<128xf32>
    %261 = vector.multi_reduction <add>, %260, %cst_85 [0] : vector<8x128xf32> to vector<128xf32>
    %262 = vector.shape_cast %261 : vector<128xf32> to vector<1x128xf32>
    %263 = vector.broadcast %248 : f32 to vector<1x128xf32>
    %264 = arith.addf %263, %262 : vector<1x128xf32>
    %265 = tpu.reciprocal %264 : vector<1x128xf32> -> vector<1x128xf32>
    %266 = vector.broadcast %265 : vector<1x128xf32> to vector<8x128xf32>
    %267 = arith.mulf %259, %266 : vector<8x128xf32>
    %268 = arith.mulf %234, %253 : vector<8x128xf32>
    %cst_86 = arith.constant dense<0.000000e+00> : vector<128xf32>
    %269 = vector.multi_reduction <add>, %268, %cst_86 [0] : vector<8x128xf32> to vector<128xf32>
    %270 = vector.shape_cast %269 : vector<128xf32> to vector<1x128xf32>
    %271 = arith.subf %255, %270 : vector<1x128xf32>
    %272 = vector.broadcast %271 : vector<1x128xf32> to vector<8x128xf32>
    %273 = arith.mulf %267, %272 : vector<8x128xf32>
    %274 = arith.addf %234, %273 : vector<8x128xf32>
    %275 = vector.shape_cast %267 : vector<8x128xf32> to vector<8x1x128xf32>
    %276 = vector.shape_cast %259 : vector<8x128xf32> to vector<1x8x128xf32>
    %277 = vector.broadcast %275 : vector<8x1x128xf32> to vector<8x8x128xf32>
    %278 = vector.broadcast %276 : vector<1x8x128xf32> to vector<8x8x128xf32>
    %279 = arith.mulf %277, %278 : vector<8x8x128xf32>
    %280 = arith.subf %242, %279 : vector<8x8x128xf32>
    %281 = vector.broadcast %251 : f32 to vector<8x8x128xf32>
    %282 = arith.mulf %280, %281 : vector<8x8x128xf32>
    %c6_87 = arith.constant 6 : index
    %c0_88 = arith.constant 0 : index
    %c0_89 = arith.constant 0 : index
    %283 = vector.load %arg6[%c6_87, %c0_88, %c0_89] : memref<8x1x128xf32, #tpu.memory_space<vmem>>, vector<1x1x128xf32>
    %284 = vector.shape_cast %283 : vector<1x1x128xf32> to vector<1x128xf32>
    %285 = vector.shape_cast %270 : vector<1x128xf32> to vector<1x1x128xf32>
    tpu.vector_store %arg6[%c6_87, %c0_88, %c0_89], %285 {strides = array<i32>} : memref<8x1x128xf32, #tpu.memory_space<vmem>>, vector<1x1x128xf32>,
    %c7_i32 = arith.constant 7 : i32
    %286 = arith.addi %5, %c7_i32 : i32
    %287 = arith.index_cast %286 : i32 to index
    %288 = memref.load %arg2[%287] : memref<16xf32, #tpu.memory_space<smem>>
    %c7_i32_90 = arith.constant 7 : i32
    %289 = arith.addi %5, %c7_i32_90 : i32
    %290 = arith.index_cast %289 : i32 to index
    %291 = memref.load %arg3[%290] : memref<16xf32, #tpu.memory_space<smem>>
    %c7 = arith.constant 7 : index
    %c0_91 = arith.constant 0 : index
    %c0_92 = arith.constant 0 : index
    %292 = vector.load %arg4[%c7, %c0_91, %c0_92] : memref<8x8x128xf32, #tpu.memory_space<vmem>>, vector<1x8x128xf32>
    %293 = vector.shape_cast %292 : vector<1x8x128xf32> to vector<8x128xf32>
    %c7_93 = arith.constant 7 : index
    %c0_94 = arith.constant 0 : index
    %c0_95 = arith.constant 0 : index
    %294 = vector.load %arg5[%c7_93, %c0_94, %c0_95] : memref<8x1x128xf32, #tpu.memory_space<vmem>>, vector<1x1x128xf32>
    %295 = vector.shape_cast %294 : vector<1x1x128xf32> to vector<1x128xf32>
    %296 = vector.shape_cast %293 : vector<8x128xf32> to vector<1x8x128xf32>
    %297 = vector.broadcast %296 : vector<1x8x128xf32> to vector<8x8x128xf32>
    %298 = arith.mulf %282, %297 : vector<8x8x128xf32>
    %cst_96 = arith.constant dense<0.000000e+00> : vector<8x128xf32>
    %299 = vector.multi_reduction <add>, %298, %cst_96 [1] : vector<8x8x128xf32> to vector<8x128xf32>
    %300 = arith.mulf %293, %299 : vector<8x128xf32>
    %cst_97 = arith.constant dense<0.000000e+00> : vector<128xf32>
    %301 = vector.multi_reduction <add>, %300, %cst_97 [0] : vector<8x128xf32> to vector<128xf32>
    %302 = vector.shape_cast %301 : vector<128xf32> to vector<1x128xf32>
    %303 = vector.broadcast %288 : f32 to vector<1x128xf32>
    %304 = arith.addf %303, %302 : vector<1x128xf32>
    %305 = tpu.reciprocal %304 : vector<1x128xf32> -> vector<1x128xf32>
    %306 = vector.broadcast %305 : vector<1x128xf32> to vector<8x128xf32>
    %307 = arith.mulf %299, %306 : vector<8x128xf32>
    %308 = arith.mulf %274, %293 : vector<8x128xf32>
    %cst_98 = arith.constant dense<0.000000e+00> : vector<128xf32>
    %309 = vector.multi_reduction <add>, %308, %cst_98 [0] : vector<8x128xf32> to vector<128xf32>
    %310 = vector.shape_cast %309 : vector<128xf32> to vector<1x128xf32>
    %311 = arith.subf %295, %310 : vector<1x128xf32>
    %312 = vector.broadcast %311 : vector<1x128xf32> to vector<8x128xf32>
    %313 = arith.mulf %307, %312 : vector<8x128xf32>
    %314 = arith.addf %274, %313 : vector<8x128xf32>
    %315 = vector.shape_cast %307 : vector<8x128xf32> to vector<8x1x128xf32>
    %316 = vector.shape_cast %299 : vector<8x128xf32> to vector<1x8x128xf32>
    %317 = vector.broadcast %315 : vector<8x1x128xf32> to vector<8x8x128xf32>
    %318 = vector.broadcast %316 : vector<1x8x128xf32> to vector<8x8x128xf32>
    %319 = arith.mulf %317, %318 : vector<8x8x128xf32>
    %320 = arith.subf %282, %319 : vector<8x8x128xf32>
    %321 = vector.broadcast %291 : f32 to vector<8x8x128xf32>
    %322 = arith.mulf %320, %321 : vector<8x8x128xf32>
    %c7_99 = arith.constant 7 : index
    %c0_100 = arith.constant 0 : index
    %c0_101 = arith.constant 0 : index
    %323 = vector.load %arg6[%c7_99, %c0_100, %c0_101] : memref<8x1x128xf32, #tpu.memory_space<vmem>>, vector<1x1x128xf32>
    %324 = vector.shape_cast %323 : vector<1x1x128xf32> to vector<1x128xf32>
    %325 = vector.shape_cast %310 : vector<1x128xf32> to vector<1x1x128xf32>
    tpu.vector_store %arg6[%c7_99, %c0_100, %c0_101], %325 {strides = array<i32>} : memref<8x1x128xf32, #tpu.memory_space<vmem>>, vector<1x1x128xf32>,
    %c0_102 = arith.constant 0 : index
    %c0_103 = arith.constant 0 : index
    %326 = vector.load %arg7[%c0_102, %c0_103] : memref<8x128xf32, #tpu.memory_space<vmem>>, vector<8x128xf32>
    tpu.vector_store %arg7[%c0_102, %c0_103], %314 {strides = array<i32>} : memref<8x128xf32, #tpu.memory_space<vmem>>, vector<8x128xf32>,
    %c0_104 = arith.constant 0 : index
    %c0_105 = arith.constant 0 : index
    %c0_106 = arith.constant 0 : index
    %327 = vector.load %arg8[%c0_104, %c0_105, %c0_106] : memref<8x8x128xf32, #tpu.memory_space<vmem>>, vector<8x8x128xf32>
    tpu.vector_store %arg8[%c0_104, %c0_105, %c0_106], %322 {strides = array<i32>} : memref<8x8x128xf32, #tpu.memory_space<vmem>>, vector<8x8x128xf32>,
    return
  }
  func.func @transform_0(%arg0: i32, %arg1: i32) -> i32 {
    %c0_i32 = arith.constant 0 : i32
    %c0_i32_0 = arith.constant 0 : i32
    return %c0_i32 : i32
  }
  func.func @transform_1(%arg0: i32, %arg1: i32) -> i32 {
    %c0_i32 = arith.constant 0 : i32
    %c0_i32_0 = arith.constant 0 : i32
    return %c0_i32 : i32
  }
  func.func @transform_2(%arg0: i32, %arg1: i32) -> (i32, i32, i32) {
    %c0_i32 = arith.constant 0 : i32
    %c0_i32_0 = arith.constant 0 : i32
    return %arg1, %c0_i32, %arg0 : i32, i32, i32
  }
  func.func @transform_3(%arg0: i32, %arg1: i32) -> (i32, i32, i32) {
    %c0_i32 = arith.constant 0 : i32
    %c0_i32_0 = arith.constant 0 : i32
    return %arg1, %c0_i32, %arg0 : i32, i32, i32
  }
  func.func @transform_4(%arg0: i32, %arg1: i32) -> (i32, i32, i32) {
    %c0_i32 = arith.constant 0 : i32
    %c0_i32_0 = arith.constant 0 : i32
    return %arg1, %c0_i32, %arg0 : i32, i32, i32
  }
  func.func @transform_5(%arg0: i32, %arg1: i32) -> (i32, i32) {
    %c0_i32 = arith.constant 0 : i32
    %c0_i32_0 = arith.constant 0 : i32
    return %c0_i32, %arg0 : i32, i32
  }
}

</mosaic_0001>

<bundles_post_ra>
// kernel: tpu_custom_call.1
= control target key start
LH: loop header
LB: loop body
LE: loop exit
PB: predicated region body
PF: predicated region fallthrough
CT: control target
= control target key end

     0   :  { %s3727_s0 = inlined_call_operand.hbm [shape: f32[16], index: 0, kind: input, shape index: {}]   ;;  %s3728_s1 = inlined_call_operand.vmem [shape: f32[16], index: 1, kind: input, shape index: {}]   ;;  %s3729_s2 = inlined_call_operand.hbm [shape: f32[16,8,128], index: 2, kind: input, shape index: {}]   ;;  %s3730_s3 = inlined_call_operand.hbm [shape: f32[16,1,128], index: 3, kind: input, shape index: {}]   ;;  %s3731_s4 = inlined_call_operand.hbm [shape: f32[16,1,128], index: 4, kind: output, shape index: {0}]   ;;  %s3732_s5 = inlined_call_operand.hbm [shape: f32[8,128], index: 5, kind: output, shape index: {1}]  }
   0x1   :  { %3740 = sst [smem:[#allocation23_spill]] %s3727_s0 }
   0x2   :  { %3741 = sst [smem:[#allocation24_spill]] %s3728_s1 }
   0x3   :  { %3742 = sst [smem:[#allocation25_spill]] %s3729_s2 }
   0x4   :  { %11 = vsyncpa [#allocation6], 0 }
   0x5   :  { %12 = vsyncpa [#allocation7], 0 }
   0x6   :  { %13 = vsyncpa [#allocation4], 0 }
   0x7   :  { %15 = vsyncpa [#allocation4 + $0x1], 0 }
   0x8   :  { %16 = vsyncpa [#allocation11], 0 }
   0x9   :  { %18 = vsyncpa [#allocation11 + $0x1], 0 }
   0xa   :  { %19 = vsyncpa [#allocation5], 0 }
   0xb   :  { %21 = vsyncpa [#allocation5 + $0x1], 0 }
   0xc   :  { %22 = vsyncpa [#allocation14], 0  ;;  %s2609_s18 = smov 0   ;;  %s2611_s19 = smov 0  }
   0xd   :  { %s2613_s20 = smov 0   ;;  %s2615_s21 = smov 0  }
   0xe   :  { %s2617_s22 = smov 0   ;;  %s2619_s23 = smov 0  }
   0xf LB: > { %s2183_s24 = sadd.s32 4294967295, %s2564_s23   ;;  %s2184_s25 = sadd.s32 4294967294, %s2564_s23   ;;  %s2564_s23 = sphi %s2619_s23, %s28_s23   ;;  %s2560_s22 = sphi %s2617_s22, %s3769_s22   ;;  %s2556_s21 = sphi %s2615_s21, %s3768_s21   ;;  %s2552_s20 = sphi %s2613_s20, %s3767_s20   ;;  %s2548_s19 = sphi %s2611_s19, %s3766_s19   ;;  %s2544_s18 = sphi %s2609_s18, %s3765_s18  }
  0x10   : > { %p98_p0 = scmp.ne.s32.totalorder %s2552_s20, %s2548_s19  ;;  %p99_p1 = scmp.eq.s32.totalorder %s2564_s23, 0 }
  0x11   : > { %p104_p2 = scmp.ne.s32.totalorder %s2548_s19, %s2544_s18  ;;  %p2647_p3 = scmp.eq.s32.totalorder %s2183_s24, 0 }
  0x12   : > { %p2651_p4 = scmp.eq.s32.totalorder %s2183_s24, 1  ;;  %p100_p5 = por %p99_p1, %p98_p0 }
  0x13   : > { %s3743_s27 = scalar_select %p2647_p3, 1, 0 }
  0x14   : > { %s3744_s28 = scalar_select %p2651_p4, 1, 0 }
  0x15   : > { %p164_p6 = scmp.eq.s32.totalorder %s2184_s25, 1  ;;  %p2657_p7 = por %p2647_p3, %p104_p2 }
  0x16   : > { %p2663_p8 = por %p2651_p4, %p98_p0  ;;  %p2185_p10 = scmp.ge.s32.totalorder %s2564_s23, 1 }
  0x17   : > { %s3745_s29 = scalar_select %p2657_p7, 1, 0 }
  0x18   : > { %s3746_s30 = scalar_select %p2663_p8, 1, 0 }
  0x19   : > { %p2667_p9 = por %p164_p6, %p104_p2  ;;  %p197_p11 = scmp.lt.s32.totalorder %s2564_s23, 3 }
  0x1a   : > { %p2272_p1 = scmp.lt.s32.totalorder %s2564_s23, 2  ;;  %s3749_s1 = sld [smem:[#allocation24_spill]] }
  0x1b   : > { %s3747_s6 = scalar_select %p2667_p9, 1, 0 }
  0x1c   : > { %p2674_p13 = pnand %p2185_p10, %p197_p11  ;;  %p2684_p4 = pnand %p2272_p1, %p100_p5 }
  0x1d   : > { %s2695_s13 = sand.u32 1, %s2552_s20   ;;  %s37_s14 = sadd.s32 1, %s2560_s22 }
  0x1e   : > { %p2252_p0 = pneg %p2674_p13  ;;  %s3752_s0 = sld [smem:[#allocation23_spill]] }
  0x20   : > { %s219_s10 = sshll.u32 %s3749_s1, 4  ;;  %p2690_p2 = pnand %p2252_p0, %p2647_p3  ;;  %s220_s10 = int_to_ptr.vmem [resolvable:$true] %s219_s10 }
  0x22   : > { %p2354_p6 = pneg %p2690_p2 }
  0x24   : > { %s2352_s17 = scalar_lea.hbm %s3752_s0, 16 }
  0x25   : > { %p2353_p5 = scmp.ne.s32.totalorder %s3752_s0, %s2352_s17  ;;  %p2359_p1 = scmp.lt.u32.totalorder %s2352_s17, %s3752_s0 }
  0x27   : > { %p2355_p10 = pnand %p2354_p6, %p2353_p5 }
  0x29   : > { %p2356_p11 = pneg %p2355_p10 }
  0x2b   : > { %p2361_p0 = pnand %p2359_p1, %p2356_p11 }
  0x2d   : > { %2364 = shalt.err (!%p2361_p0)
}
  0x2e   : > { %s2566_s26 = smov [#allocation3]   ;;  %s2365_s16 = scalar_lea.vmem %s220_s10, 16 }
  0x2f   : > { %2255 = dma.hbm_to_smem (!%p2690_p2), %s3752_s0, 16, %s2566_s26, [#allocation6]  }
  0x30   : > { %p2366_p12 = scmp.ne.s32.totalorder %s220_s10, %s2365_s16  ;;  %p2373_p7 = scmp.lt.s32.totalorder %s220_s10, %s220_s10 }
  0x31   : > { %p2374_p5 = scmp.lt.s32.totalorder %s2365_s16, %s2365_s16 }
  0x32   : > { %p2368_p9 = pnand %p2366_p12, %p2354_p6 }
  0x33   : > { %p2375_p10 = por %p2374_p5, %p2373_p7 }
  0x34   : > { %p2369_p8 = pneg %p2368_p9 }
  0x36   : > { %p2376_p3 = pnand %p2375_p10, %p2369_p8 }
  0x38   : > { %2379 = shalt.err (!%p2376_p3)
}
  0x39   : > { %s2567_s24 = smov [#allocation8]   ;;  %p38_p11 = scmp.ge.s32.totalorder %s37_s14, 2 }
  0x3a   : > { %2258 = dma.vmem_to_smem (!%p2690_p2), %s220_s10, 16, %s2567_s24, [#allocation7]  }
  0x3b   : > { %s2189_s1 = sshll.u32 %s2695_s13, 6  ;;  %s2231_s26 = sshll.u32 %s2560_s22, 10 }
  0x3c   : > { %s3771_s14 = smov (%p38_p11, %s37_s14), 0  ;;  %s3754_s2 = sld [smem:[#allocation25_spill]] }
  0x3d   : > { %3753 = sst [smem:[#allocation21_spill]] %s3771_s14  ;;  %s86_s12 = ssub.s32 %s2560_s22, %s3771_s14 }
  0x3e   : > { %s234_s9 = scalar_lea.vmem [#allocation9], %s2189_s1  ;;  %p89_p3 = scmp.eq.s32.totalorder %s86_s12, 0 }
  0x3f   : > { %s242_s15 = sshll.u32 %s234_s9, 4  ;;  %s3755_s10 = sadd.s32 1, %s2552_s20  ;;  %s2727_s15 = int_to_ptr.vmem [resolvable:$true] %s242_s15 }
  0x40   : > { %s2732_s16 = scalar_select %p89_p3, %s2552_s20, %s3755_s10  }
  0x41   : > { %s231_s24 = scalar_lea.sflag [#allocation4], %s2695_s13  ;;  %p2382_p8 = pneg %p2684_p4 }
  0x42   : > { %s2723_s8 = scalar_lea.hbm %s3754_s2, %s2231_s26  ;;  %3756 = sst [smem:[#allocation22_spill]] %s2732_s16 }
  0x43   : > { %s2380_s0 = scalar_lea.hbm %s2723_s8, 1024  ;;  %s2385_s1 = scalar_lea.hbm %s3754_s2, 2048 }
  0x44   : > { %p2381_p7 = scmp.ne.s32.totalorder %s2723_s8, %s2380_s0  ;;  %p2386_p2 = scmp.lt.u32.totalorder %s2723_s8, %s3754_s2 }
  0x45   : > { %p2387_p6 = scmp.lt.u32.totalorder %s2385_s1, %s2380_s0  ;;  %p2389_p0 = scmp.lt.u32.totalorder %s2380_s0, %s2723_s8 }
  0x46   : > { %p2383_p9 = pnand %p2382_p8, %p2381_p7 }
  0x47   : > { %p2388_p1 = por %p2387_p6, %p2386_p2 }
  0x48   : > { %p2384_p12 = pneg %p2383_p9 }
  0x49   : > { %p2390_p5 = por %p2389_p0, %p2388_p1 }
  0x4b   : > { %p2391_p10 = pnand %p2390_p5, %p2384_p12 }
  0x4d   : > { %2394 = shalt.err (!%p2391_p10)
}
  0x4e   : > { %s2395_s9 = scalar_lea.vmem %s2727_s15, 1024  ;;  %s2568_s10 = smov [#allocation9]  }
  0x4f   : > { %p2396_p11 = scmp.ne.s32.totalorder %s2727_s15, %s2395_s9  ;;  %s2400_s26 = sshll.u32 %s2568_s10, 4  ;;  %s2401_s26 = int_to_ptr.vmem [resolvable:$false] %s2400_s26 }
  0x50   : > { %s2402_s17 = scalar_lea.vmem %s2401_s26, 2048  ;;  %p2403_p9 = scmp.lt.s32.totalorder %s2727_s15, %s2401_s26 }
  0x51   : > { %p2398_p3 = pnand %p2396_p11, %p2382_p8  ;;  %p2404_p2 = scmp.lt.s32.totalorder %s2402_s17, %s2395_s9 }
  0x53   : > { %p2399_p7 = pneg %p2398_p3  ;;  %p2405_p6 = por %p2404_p2, %p2403_p9 }
  0x55   : > { %p2406_p1 = pnand %p2405_p6, %p2399_p7 }
  0x57   : > { %2409 = shalt.err (!%p2406_p1)
}
  0x58   : > { %s2569_s0 = smov 128   ;;  %s2570_s1 = smov 8  }
  0x59   : > { %2262 = dma.hbm_to_vmem [thread:$0]  (!%p2684_p4), %s2723_s8, 1024, %s2727_s15, %s231_s24, %s2569_s0, %s2569_s0, %s2570_s1  }
  0x5a   : > { %s2192_s25 = sshll.u32 %s2695_s13, 3  ;;  %s2232_s12 = sshll.u32 %s2560_s22, 7 }
  0x5b   : > { %s2767_s26 = scalar_lea.hbm %s3730_s3, %s2232_s12  ;;  %s256_s17 = scalar_lea.vmem [#allocation10], %s2192_s25 }
  0x5c   : > { %s264_s2 = sshll.u32 %s256_s17, 4  ;;  %s253_s14 = scalar_lea.sflag [#allocation11], %s2695_s13  ;;  %s2769_s2 = int_to_ptr.vmem [resolvable:$true] %s264_s2 }
  0x5d   : > { %s2410_s16 = scalar_lea.hbm %s2767_s26, 128  ;;  %s2415_s24 = scalar_lea.hbm %s3730_s3, 256 }
  0x5e   : > { %p2411_p12 = scmp.ne.s32.totalorder %s2767_s26, %s2410_s16  ;;  %p2416_p10 = scmp.lt.u32.totalorder %s2767_s26, %s3730_s3 }
  0x5f   : > { %p2417_p11 = scmp.lt.u32.totalorder %s2415_s24, %s2410_s16  ;;  %p2419_p7 = scmp.lt.u32.totalorder %s2410_s16, %s2767_s26 }
  0x60   : > { %p2413_p0 = pnand %p2411_p12, %p2382_p8 }
  0x61   : > { %p2418_p3 = por %p2417_p11, %p2416_p10 }
  0x62   : > { %p2414_p5 = pneg %p2413_p0 }
  0x63   : > { %p2420_p9 = por %p2419_p7, %p2418_p3 }
  0x65   : > { %p2421_p2 = pnand %p2420_p9, %p2414_p5 }
  0x67   : > { %2424 = shalt.err (!%p2421_p2)
}
  0x68   : > { %s2425_s25 = scalar_lea.vmem %s2769_s2, 128  ;;  %s2571_s12 = smov [#allocation10]  }
  0x69   : > { %p2426_p6 = scmp.ne.s32.totalorder %s2769_s2, %s2425_s25  ;;  %s2430_s10 = sshll.u32 %s2571_s12, 4  ;;  %s2431_s10 = int_to_ptr.vmem [resolvable:$false] %s2430_s10 }
  0x6a   : > { %s2432_s9 = scalar_lea.vmem %s2431_s10, 256  ;;  %p2433_p0 = scmp.lt.s32.totalorder %s2769_s2, %s2431_s10 }
  0x6b   : > { %p2428_p1 = pnand %p2426_p6, %p2382_p8  ;;  %p2434_p10 = scmp.lt.s32.totalorder %s2432_s9, %s2425_s25 }
  0x6d   : > { %p2429_p12 = pneg %p2428_p1  ;;  %p2435_p11 = por %p2434_p10, %p2433_p0 }
  0x6f   : > { %p2436_p3 = pnand %p2435_p11, %p2429_p12 }
  0x71   : > { %2439 = shalt.err (!%p2436_p3)
}
  0x72   : > { %s2572_s16 = smov 16   ;;  %s2573_s17 = smov 1  }
  0x73   : > { %2265 = dma.hbm_to_vmem [thread:$0]  (!%p2684_p4), %s2767_s26, 128, %s2769_s2, %s253_s14, %s2572_s16, %s2572_s16, %s2573_s17  }
  0x74   : > { %276 = sbr.rel (%p2674_p13) target bundleno = 693 (0x2b5), region = 36  ;;  %p3757_p8 = scmp.ne.s32.totalorder (!%p2674_p13), %s3743_s27, 0 }
  0x7b   : > { %2519 = dma.done.wait (%p3757_p8), [#allocation6], 16  }
  0x7c   : > { %2521 = vsyncadd (%p3757_p8), [#allocation6], 4294967280 }
  0x7d   : > { %2523 = dma.done.wait (%p3757_p8), [#allocation7], 16  }
  0x7e   : > { %2525 = vsyncadd (%p3757_p8), [#allocation7], 4294967280  ;;  %s2808_s11 = sand.u32 1, %s2548_s19   ;;  %p3758_p4 = scmp.ne.s32.totalorder %s3745_s29, 0 }
  0x7f   : > { %s2198_s2 = sshll.u32 %s2808_s11, 6  ;;  %s287_s7 = scalar_lea.sflag [#allocation4], %s2808_s11 }
  0x80   : > { %s2812_s13 = scalar_lea.vmem [#allocation9], %s2198_s2 }
  0x81   : > { %2527 = dma.done.wait (%p3758_p4), %s287_s7, 1024  }
  0x82   : > { %2529 = vsyncadd (%p3758_p4), %s287_s7, 4294966272  ;;  %s2199_s27 = sshll.u32 %s2808_s11, 3  ;;  %s296_s14 = scalar_lea.sflag [#allocation11], %s2808_s11 }
  0x83   : > { %s2820_s26 = scalar_lea.vmem [#allocation10], %s2199_s27 }
  0x84   : > { %2531 = dma.done.wait (%p3758_p4), %s296_s14, 128  }
  0x85   : > { %2533 = vsyncadd (%p3758_p4), %s296_s14, 4294967168 }
  0x86   : > { %304 = sfence }
  0x87   : > { %s2826_s8 = scalar_lea.vmem [#allocation12], %s2199_s27  ;;  %p2201_p13 = scmp.ne.s32.totalorder %s2556_s21, 0 }
  0x88   : > { %v348_v0 = vlaneseq (!%p2201_p13)  ;;  %v2574_v1 = vmov (!%p2201_p13), 0.0  }
  0x89   : > { %338 = sbr.rel (%p2201_p13) target bundleno = 146 (0x92), region = 56  ;;  %340 = vst [vmem:[#allocation2] sm:$0xff] (!%p2201_p13), %v2574_v1  ;;  %339 = vst [vmem:[#allocation13] sm:$0xff] (!%p2201_p13), %v2574_v1 }
  0x8a   : > { %341 = vst [vmem:[#allocation2 + $0x8] sm:$0xff] (!%p2201_p13), %v2574_v1  ;;  %342 = vst [vmem:[#allocation2 + $0x10] sm:$0xff] (!%p2201_p13), %v2574_v1  ;;  %v349_v2 = vand.u32 (!%p2201_p13), 127, %v348_v0 }
  0x8b   : > { %343 = vst [vmem:[#allocation2 + $0x18] sm:$0xff] (!%p2201_p13), %v2574_v1  ;;  %344 = vst [vmem:[#allocation2 + $0x20] sm:$0xff] (!%p2201_p13), %v2574_v1 }
  0x8c   : > { %345 = vst [vmem:[#allocation2 + $0x28] sm:$0xff] (!%p2201_p13), %v2574_v1  ;;  %346 = vst [vmem:[#allocation2 + $0x30] sm:$0xff] (!%p2201_p13), %v2574_v1  ;;  %vm353_vm0 = vcmp.lt.s32.totalorder (!%p2201_p13), %v349_v2, 2 }
  0x8d   : > { %347 = vst [vmem:[#allocation2 + $0x38] sm:$0xff] (!%p2201_p13), %v2574_v1  ;;  %v354_v3 = vsel (!%p2201_p13), %vm353_vm0, 1.0, %v2574_v1 }
  0x8e   : > { %355 = vst [vmem:[#allocation2] sm:$0x1] (!%p2201_p13), %v354_v3  ;;  %357 = vst [vmem:[#allocation2 + $0x9] sm:$0x1] (!%p2201_p13), %v354_v3 }
  0x8f   : > { %359 = vst [vmem:[#allocation2 + $0x12] sm:$0x1] (!%p2201_p13), %v354_v3  ;;  %361 = vst [vmem:[#allocation2 + $0x1b] sm:$0x1] (!%p2201_p13), %v354_v3 }
  0x90   : > { %363 = vst [vmem:[#allocation2 + $0x24] sm:$0x1] %v354_v3  ;;  %365 = vst [vmem:[#allocation2 + $0x2d] sm:$0x1] %v354_v3 }
  0x91   : > { %367 = vst [vmem:[#allocation2 + $0x36] sm:$0x1] %v354_v3  ;;  %369 = vst [vmem:[#allocation2 + $0x3f] sm:$0x1] %v354_v3 }
  0x92 PF: > { %v2846_v12 = vld [vmem:[%s2812_s13] sm:$0xff]  ;;  %vm448_vm1 = vcmask 1041409   ;;  %vm450_vm2 = vcmask 1042434   ;;  %vm452_vm3 = vcmask 1043459   ;;  %vm454_vm4 = vcmask 1044484   ;;  %s2878_s29 = sshll.u32 %s2556_s21, 3 }
  0x93   : > { %v2864_v57 = vld [vmem:[#allocation13] sm:$0xff]  ;;  %vm456_vm5 = vcmask 1045509   ;;  %vm458_vm6 = vcmask 1046534   ;;  %vm460_vm7 = vcmask 1047559   ;;  %s380_s15 = sld [smem:[#allocation3 + %s2878_s29]]  ;;  %s585_s0 = sadd.s32 1, %s2878_s29 }
  0x94   : > { %s381_s24 = sld [smem:[#allocation8 + %s2878_s29]]  ;;  %s787_s12 = sadd.s32 2, %s2878_s29 }
  0x95   : > { %s586_s1 = sld [smem:[#allocation3 + %s585_s0]]  ;;  %s989_s16 = sadd.s32 3, %s2878_s29 }
  0x96   : > { %s587_s25 = sld [smem:[#allocation8 + %s585_s0]]  ;;  %s1191_s7 = sadd.s32 4, %s2878_s29 }
  0x97   : > { %v2829_v4 = vld [vmem:[#allocation2] sm:$0xff]  ;;  %v2831_v5 = vld [vmem:[#allocation2 + $0x8] sm:$0xff]  ;;  %s788_s10 = sld [smem:[#allocation3 + %s787_s12]]  ;;  %p3759_p7 = scmp.ne.s32.totalorder %s3746_s30, 0 }
  0x98   : > { %v2833_v6 = vld [vmem:[#allocation2 + $0x10] sm:$0xff]  ;;  %v2835_v7 = vld [vmem:[#allocation2 + $0x18] sm:$0xff]  ;;  %v384_v13 = vmul.f32 %v2846_v12, %v2829_v4  ;;  %v385_v14 = vmul.f32 %v2846_v12, %v2831_v5  ;;  %s789_s9 = sld [smem:[#allocation8 + %s787_s12]] }
  0x99   : > { %v2837_v8 = vld [vmem:[#allocation2 + $0x20] sm:$0xff]  ;;  %v2839_v9 = vld [vmem:[#allocation2 + $0x28] sm:$0xff]  ;;  %v2841_v10 = vld [vmem:[#allocation2 + $0x30] sm:$0xff]  ;;  %v386_v15 = vmul.f32 %v2846_v12, %v2833_v6  ;;  %v387_v16 = vmul.f32 %v2846_v12, %v2835_v7  ;;  %s990_s17 = sld [smem:[#allocation3 + %s989_s16]] }
  0x9a   : > { %v2843_v11 = vld [vmem:[#allocation2 + $0x38] sm:$0xff]  ;;  %v388_v17 = vmul.f32 %v2846_v12, %v2837_v8  ;;  %v389_v18 = vmul.f32 %v2846_v12, %v2839_v9  ;;  %v390_v19 = vmul.f32 %v2846_v12, %v2841_v10  ;;  %v392_v21 = vrot.slane %v384_v13, 4  ;;  %s991_s2 = sld [smem:[#allocation8 + %s989_s16]] }
  0x9b   : > { %v391_v20 = vmul.f32 %v2846_v12, %v2843_v11  ;;  %v398_v22 = vrot.slane %v385_v14, 4  ;;  %v404_v23 = vrot.slane %v386_v15, 4  ;;  %v410_v24 = vrot.slane %v387_v16, 4  ;;  %s1192_s27 = sld [smem:[#allocation3 + %s1191_s7]] }
  0x9c   : > { %v416_v25 = vrot.slane %v388_v17, 4  ;;  %v422_v26 = vrot.slane %v389_v18, 4  ;;  %v428_v27 = vrot.slane %v390_v19, 4  ;;  %v393_v29 = vadd.f32 %v392_v21, %v384_v13  ;;  %s1193_s14 = sld [smem:[#allocation8 + %s1191_s7]] }
  0x9d   : > { %v434_v28 = vrot.slane %v391_v20, 4  ;;  %v399_v30 = vadd.f32 %v398_v22, %v385_v14  ;;  %v405_v31 = vadd.f32 %v404_v23, %v386_v15  ;;  %v411_v32 = vadd.f32 %v410_v24, %v387_v16 }
  0x9e   : > { %v417_v33 = vadd.f32 %v416_v25, %v388_v17  ;;  %v423_v34 = vadd.f32 %v422_v26, %v389_v18  ;;  %v429_v35 = vadd.f32 %v428_v27, %v390_v19  ;;  %v394_v37 = vrot.slane %v393_v29, 2 }
  0x9f   : > { %v435_v36 = vadd.f32 %v434_v28, %v391_v20  ;;  %v400_v38 = vrot.slane %v399_v30, 2  ;;  %v406_v39 = vrot.slane %v405_v31, 2  ;;  %v412_v40 = vrot.slane %v411_v32, 2 }
  0xa0   : > { %v418_v41 = vrot.slane %v417_v33, 2  ;;  %v424_v42 = vrot.slane %v423_v34, 2  ;;  %v430_v43 = vrot.slane %v429_v35, 2  ;;  %v395_v45 = vadd.f32 %v394_v37, %v393_v29 }
  0xa1   : > { %v436_v44 = vrot.slane %v435_v36, 2  ;;  %v401_v46 = vadd.f32 %v400_v38, %v399_v30  ;;  %v407_v47 = vadd.f32 %v406_v39, %v405_v31  ;;  %v413_v48 = vadd.f32 %v412_v40, %v411_v32  ;;  %v383_v39 = vld [vmem:[%s2820_s26] sm:$0x1] }
  0xa2   : > { %v419_v49 = vadd.f32 %v418_v41, %v417_v33  ;;  %v425_v50 = vadd.f32 %v424_v42, %v423_v34  ;;  %v431_v51 = vadd.f32 %v430_v43, %v429_v35  ;;  %v396_v53 = vrot.slane %v395_v45, 1 }
  0xa3   : > { %v437_v52 = vadd.f32 %v436_v44, %v435_v36  ;;  %v402_v54 = vrot.slane %v401_v46, 1  ;;  %v408_v55 = vrot.slane %v407_v47, 1  ;;  %v414_v56 = vrot.slane %v413_v48, 1 }
  0xa4   : > { %v420_v58 = vrot.slane %v419_v49, 1  ;;  %v426_v59 = vrot.slane %v425_v50, 1  ;;  %v432_v60 = vrot.slane %v431_v51, 1  ;;  %v397_v62 = vadd.f32 %v396_v53, %v395_v45 }
  0xa5   : > { %v438_v61 = vrot.slane %v437_v52, 1  ;;  %v403_v63 = vadd.f32 %v402_v54, %v401_v46  ;;  %v409_v0 = vadd.f32 %v408_v55, %v407_v47  ;;  %v415_v1 = vadd.f32 %v414_v56, %v413_v48 }
  0xa6   : > { %v421_v2 = vadd.f32 %v420_v58, %v419_v49  ;;  %v427_v3 = vadd.f32 %v426_v59, %v425_v50  ;;  %v481_v14 = vmul.f32 %v2846_v12, %v2864_v57  ;;  %v433_v15 = vadd.f32 %v432_v60, %v431_v51 }
  0xa7   : > { %v449_v13 = vsel %vm448_vm1, %v403_v63, %v397_v62  ;;  %v439_v17 = vadd.f32 %v438_v61, %v437_v52  ;;  %v470_v35 = vstv %s380_s15  ;;  %v490_v38 = vlaneseq  ;;  %s1393_s15 = sadd.s32 5, %s2878_s29 }
  0xa8   : > { %v451_v16 = vsel %vm450_vm2, %v409_v0, %v449_v13  ;;  %v482_v19 = vrot.slane %v481_v14, 4  ;;  %v2889_v44 = vstv %s381_s24  ;;  %s1394_s24 = sld [smem:[#allocation3 + %s1393_s15]] }
  0xa9   : > { %v453_v18 = vsel %vm452_vm3, %v415_v1, %v451_v16  ;;  %s1395_s0 = sld [smem:[#allocation8 + %s1393_s15]] }
  0xaa   : > { %v455_v20 = vsel %vm454_vm4, %v421_v2, %v453_v18  ;;  %v483_v22 = vadd.f32 %v482_v19, %v481_v14 }
  0xab   : > { %v457_v21 = vsel %vm456_vm5, %v427_v3, %v455_v20 }
  0xac   : > { %v459_v23 = vsel %vm458_vm6, %v433_v15, %v457_v21  ;;  %v484_v25 = vrot.slane %v483_v22, 2 }
  0xad   : > { %v2875_v24 = vsel %vm460_vm7, %v439_v17, %v459_v23 }
  0xae   : > { %v463_v26 = vmul.f32 %v2875_v24, %v2846_v12  ;;  %v485_v27 = vadd.f32 %v484_v25, %v483_v22  ;;  %v491_v12 = vshrl.u32 %v490_v38, 7 }
  0xb0   : > { %v464_v28 = vrot.slane %v463_v26, 4  ;;  %v486_v29 = vrot.slane %v485_v27, 1  ;;  %v2886_v41 = vsub.s32 0, %v491_v12 }
  0xb2   : > { %v465_v30 = vadd.f32 %v464_v28, %v463_v26  ;;  %v487_v31 = vadd.f32 %v486_v29, %v485_v27 }
  0xb4   : > { %v466_v32 = vrot.slane %v465_v30, 2  ;;  %584 = vst [vmem:[%s2826_s8] sm:$0x1] %v487_v31  ;;  %v488_v40 = vsub.f32 %v383_v39, %v487_v31 }
  0xb6   : > { %v467_v33 = vadd.f32 %v466_v32, %v465_v30  ;;  %v493_v42 = vrot.slane %v488_v40, %v2886_v41 }
  0xb8   : > { %v468_v34 = vrot.slane %v467_v33, 1 }
  0xba   : > { %v469_v36 = vadd.f32 %v468_v34, %v467_v33 }
  0xbc   : > { %v471_v37 = vadd.f32 %v470_v35, %v469_v36 }
  0xbe   : > { %2336 = vrcp.f32 %v471_v37 }
  0xc8   : > { %v2337_v43 = vpop.eup %2336 }
  0xc9   : > { %v473_v45 = vmul.f32 %v2337_v43, %v397_v62  ;;  %v474_v46 = vmul.f32 %v2337_v43, %v403_v63  ;;  %v475_v47 = vmul.f32 %v2337_v43, %v409_v0  ;;  %v476_v48 = vmul.f32 %v2337_v43, %v415_v1 }
  0xca   : > { %v477_v49 = vmul.f32 %v2337_v43, %v421_v2  ;;  %v478_v50 = vmul.f32 %v2337_v43, %v427_v3  ;;  %v479_v51 = vmul.f32 %v2337_v43, %v433_v15  ;;  %v480_v52 = vmul.f32 %v2337_v43, %v439_v17 }
  0xcb   : > { %v495_v53 = vmul.f32 %v493_v42, %v473_v45  ;;  %v496_v54 = vmul.f32 %v493_v42, %v474_v46  ;;  %v497_v55 = vmul.f32 %v493_v42, %v475_v47  ;;  %v498_v56 = vmul.f32 %v493_v42, %v476_v48 }
  0xcc   : > { %v499_v58 = vmul.f32 %v493_v42, %v477_v49  ;;  %v500_v59 = vmul.f32 %v493_v42, %v478_v50  ;;  %v501_v60 = vmul.f32 %v493_v42, %v479_v51  ;;  %v502_v61 = vmul.f32 %v493_v42, %v480_v52 }
  0xcd   : > { %v511_v13 = vrot.slane %v496_v54, 7  ;;  %v513_v14 = vrot.slane %v497_v55, 6  ;;  %v515_v16 = vrot.slane %v498_v56, 5  ;;  %v530_v62 = vrot.slane %v473_v45, %v2886_v41  ;;  %v2921_v45 = vld [vmem:[%s2812_s13 + $0x8] sm:$0xff] }
  0xce   : > { %v517_v63 = vrot.slane %v499_v58, 4  ;;  %v519_v0 = vrot.slane %v500_v59, 3  ;;  %v521_v1 = vrot.slane %v501_v60, 2  ;;  %v523_v2 = vrot.slane %v502_v61, 1 }
  0xcf   : > { %v512_v3 = vsel %vm448_vm1, %v511_v13, %v495_v53  ;;  %v534_v15 = vrot.slane %v474_v46, %v2886_v41  ;;  %v538_v17 = vrot.slane %v475_v47, %v2886_v41  ;;  %v542_v18 = vrot.slane %v476_v48, %v2886_v41 }
  0xd0   : > { %v514_v19 = vsel %vm450_vm2, %v513_v14, %v512_v3  ;;  %v546_v20 = vrot.slane %v477_v49, %v2886_v41  ;;  %v550_v21 = vrot.slane %v478_v50, %v2886_v41  ;;  %v554_v22 = vrot.slane %v479_v51, %v2886_v41 }
  0xd1   : > { %v516_v23 = vsel %vm452_vm3, %v515_v16, %v514_v19  ;;  %v558_v25 = vrot.slane %v480_v52, %v2886_v41  ;;  %v559_v26 = vmul.f32 %v530_v62, %v2875_v24  ;;  %v560_v27 = vmul.f32 %v534_v15, %v2875_v24 }
  0xd2   : > { %v518_v28 = vsel %vm454_vm4, %v517_v63, %v516_v23  ;;  %v561_v29 = vmul.f32 %v538_v17, %v2875_v24  ;;  %v562_v30 = vmul.f32 %v542_v18, %v2875_v24  ;;  %v563_v31 = vmul.f32 %v546_v20, %v2875_v24 }
  0xd3   : > { %v520_v32 = vsel %vm456_vm5, %v519_v0, %v518_v28  ;;  %v564_v33 = vmul.f32 %v550_v21, %v2875_v24  ;;  %v565_v34 = vmul.f32 %v554_v22, %v2875_v24  ;;  %v566_v35 = vmul.f32 %v558_v25, %v2875_v24 }
  0xd4   : > { %v522_v36 = vsel %vm458_vm6, %v521_v1, %v520_v32  ;;  %v567_v37 = vsub.f32 %v2829_v4, %v559_v26  ;;  %v568_v38 = vsub.f32 %v2831_v5, %v560_v27  ;;  %v569_v39 = vsub.f32 %v2833_v6, %v561_v29 }
  0xd5   : > { %v524_v12 = vsel %vm460_vm7, %v523_v2, %v522_v36  ;;  %v570_v40 = vsub.f32 %v2835_v7, %v562_v30  ;;  %v571_v42 = vsub.f32 %v2837_v8, %v563_v31  ;;  %v572_v43 = vsub.f32 %v2839_v9, %v564_v33 }
  0xd6   : > { %v2924_v24 = vadd.f32 %v524_v12, %v2864_v57  ;;  %v573_v46 = vsub.f32 %v2841_v10, %v565_v34  ;;  %v574_v4 = vsub.f32 %v2843_v11, %v566_v35  ;;  %v2929_v5 = vmul.f32 %v2889_v44, %v567_v37 }
  0xd7   : > { %v2932_v6 = vmul.f32 %v2889_v44, %v568_v38  ;;  %v2935_v7 = vmul.f32 %v2889_v44, %v569_v39  ;;  %v2938_v8 = vmul.f32 %v2889_v44, %v570_v40  ;;  %v2941_v9 = vmul.f32 %v2889_v44, %v571_v42 }
  0xd8   : > { %v2944_v57 = vmul.f32 %v2889_v44, %v572_v43  ;;  %v2947_v10 = vmul.f32 %v2889_v44, %v573_v46  ;;  %v2950_v11 = vmul.f32 %v2889_v44, %v574_v4  ;;  %v592_v47 = vmul.f32 %v2921_v45, %v2929_v5 }
  0xd9   : > { %v593_v48 = vmul.f32 %v2921_v45, %v2932_v6  ;;  %v594_v49 = vmul.f32 %v2921_v45, %v2935_v7  ;;  %v595_v50 = vmul.f32 %v2921_v45, %v2938_v8  ;;  %v596_v51 = vmul.f32 %v2921_v45, %v2941_v9 }
  0xda   : > { %v597_v52 = vmul.f32 %v2921_v45, %v2944_v57  ;;  %v598_v44 = vmul.f32 %v2921_v45, %v2947_v10  ;;  %v599_v53 = vmul.f32 %v2921_v45, %v2950_v11  ;;  %v600_v54 = vrot.slane %v592_v47, 4 }
  0xdb   : > { %v606_v55 = vrot.slane %v593_v48, 4  ;;  %v612_v56 = vrot.slane %v594_v49, 4  ;;  %v618_v58 = vrot.slane %v595_v50, 4  ;;  %v624_v59 = vrot.slane %v596_v51, 4 }
  0xdc   : > { %v601_v60 = vadd.f32 %v600_v54, %v592_v47  ;;  %v630_v61 = vrot.slane %v597_v52, 4  ;;  %v636_v13 = vrot.slane %v598_v44, 4  ;;  %v642_v14 = vrot.slane %v599_v53, 4 }
  0xdd   : > { %v607_v16 = vadd.f32 %v606_v55, %v593_v48  ;;  %v613_v62 = vadd.f32 %v612_v56, %v594_v49  ;;  %v619_v63 = vadd.f32 %v618_v58, %v595_v50  ;;  %v625_v0 = vadd.f32 %v624_v59, %v596_v51 }
  0xde   : > { %v602_v1 = vrot.slane %v601_v60, 2  ;;  %v631_v2 = vadd.f32 %v630_v61, %v597_v52  ;;  %v637_v3 = vadd.f32 %v636_v13, %v598_v44  ;;  %v643_v15 = vadd.f32 %v642_v14, %v599_v53 }
  0xdf   : > { %v608_v17 = vrot.slane %v607_v16, 2  ;;  %v614_v18 = vrot.slane %v613_v62, 2  ;;  %v620_v19 = vrot.slane %v619_v63, 2  ;;  %v626_v20 = vrot.slane %v625_v0, 2 }
  0xe0   : > { %v603_v21 = vadd.f32 %v602_v1, %v601_v60  ;;  %v632_v22 = vrot.slane %v631_v2, 2  ;;  %v638_v23 = vrot.slane %v637_v3, 2  ;;  %v644_v25 = vrot.slane %v643_v15, 2 }
  0xe1   : > { %v609_v26 = vadd.f32 %v608_v17, %v607_v16  ;;  %v615_v27 = vadd.f32 %v614_v18, %v613_v62  ;;  %v621_v28 = vadd.f32 %v620_v19, %v619_v63  ;;  %v627_v29 = vadd.f32 %v626_v20, %v625_v0  ;;  %v2204_v18 = vld [vmem:[%s2820_s26 + $0x1] sm:$0x1] }
  0xe2   : > { %v604_v30 = vrot.slane %v603_v21, 1  ;;  %v633_v31 = vadd.f32 %v632_v22, %v631_v2  ;;  %v639_v32 = vadd.f32 %v638_v23, %v637_v3  ;;  %v645_v33 = vadd.f32 %v644_v25, %v643_v15 }
  0xe3   : > { %v610_v34 = vrot.slane %v609_v26, 1  ;;  %v616_v35 = vrot.slane %v615_v27, 1  ;;  %v622_v36 = vrot.slane %v621_v28, 1  ;;  %v628_v37 = vrot.slane %v627_v29, 1 }
  0xe4   : > { %v605_v38 = vadd.f32 %v604_v30, %v603_v21  ;;  %v634_v39 = vrot.slane %v633_v31, 1  ;;  %v640_v12 = vrot.slane %v639_v32, 1  ;;  %v646_v46 = vrot.slane %v645_v33, 1 }
  0xe5   : > { %v611_v40 = vadd.f32 %v610_v34, %v609_v26  ;;  %v617_v42 = vadd.f32 %v616_v35, %v615_v27  ;;  %v623_v43 = vadd.f32 %v622_v36, %v621_v28  ;;  %v629_v4 = vadd.f32 %v628_v37, %v627_v29 }
  0xe6   : > { %v682_v47 = vmul.f32 %v2921_v45, %v2924_v24  ;;  %v635_v48 = vadd.f32 %v634_v39, %v633_v31  ;;  %v641_v50 = vadd.f32 %v640_v12, %v639_v32  ;;  %v647_v44 = vadd.f32 %v646_v46, %v645_v33 }
  0xe7   : > { %v656_v49 = vsel %vm448_vm1, %v611_v40, %v605_v38  ;;  %v671_v3 = vstv %s586_s1  ;;  %v2985_v21 = vstv %s587_s25  ;;  %s1595_s1 = sadd.s32 6, %s2878_s29 }
  0xe8   : > { %v657_v51 = vsel %vm450_vm2, %v617_v42, %v656_v49  ;;  %v683_v52 = vrot.slane %v682_v47, 4  ;;  %s1596_s25 = sld [smem:[#allocation3 + %s1595_s1]] }
  0xe9   : > { %v658_v53 = vsel %vm452_vm3, %v623_v43, %v657_v51  ;;  %s1597_s12 = sld [smem:[#allocation8 + %s1595_s1]] }
  0xea   : > { %v659_v54 = vsel %vm454_vm4, %v629_v4, %v658_v53  ;;  %v684_v55 = vadd.f32 %v683_v52, %v682_v47 }
  0xeb   : > { %v660_v56 = vsel %vm456_vm5, %v635_v48, %v659_v54 }
  0xec   : > { %v661_v58 = vsel %vm458_vm6, %v641_v50, %v660_v56  ;;  %v685_v59 = vrot.slane %v684_v55, 2 }
  0xed   : > { %v2977_v60 = vsel %vm460_vm7, %v647_v44, %v661_v58 }
  0xee   : > { %v664_v61 = vmul.f32 %v2921_v45, %v2977_v60  ;;  %v686_v13 = vadd.f32 %v685_v59, %v684_v55 }
  0xf0   : > { %v665_v14 = vrot.slane %v664_v61, 4  ;;  %v687_v16 = vrot.slane %v686_v13, 1 }
  0xf2   : > { %v666_v62 = vadd.f32 %v665_v14, %v664_v61  ;;  %v688_v63 = vadd.f32 %v687_v16, %v686_v13 }
  0xf4   : > { %v667_v0 = vrot.slane %v666_v62, 2  ;;  %2205 = vst [vmem:[%s2826_s8 + $0x1] sm:$0x1] %v688_v63  ;;  %v689_v19 = vsub.f32 %v2204_v18, %v688_v63 }
  0xf6   : > { %v668_v1 = vadd.f32 %v667_v0, %v666_v62  ;;  %v694_v45 = vrot.slane %v689_v19, %v2886_v41 }
  0xf8   : > { %v669_v2 = vrot.slane %v668_v1, 1 }
  0xfa   : > { %v670_v15 = vadd.f32 %v669_v2, %v668_v1 }
  0xfc   : > { %v672_v17 = vadd.f32 %v671_v3, %v670_v15 }
  0xfe   : > { %2338 = vrcp.f32 %v672_v17 }
 0x108   : > { %v2339_v20 = vpop.eup %2338 }
 0x109   : > { %v674_v22 = vmul.f32 %v2339_v20, %v605_v38  ;;  %v675_v23 = vmul.f32 %v2339_v20, %v611_v40  ;;  %v676_v25 = vmul.f32 %v2339_v20, %v617_v42  ;;  %v677_v26 = vmul.f32 %v2339_v20, %v623_v43 }
 0x10a   : > { %v678_v27 = vmul.f32 %v2339_v20, %v629_v4  ;;  %v679_v28 = vmul.f32 %v2339_v20, %v635_v48  ;;  %v680_v29 = vmul.f32 %v2339_v20, %v641_v50  ;;  %v681_v30 = vmul.f32 %v2339_v20, %v647_v44 }
 0x10b   : > { %v696_v31 = vmul.f32 %v694_v45, %v674_v22  ;;  %v697_v32 = vmul.f32 %v694_v45, %v675_v23  ;;  %v698_v33 = vmul.f32 %v694_v45, %v676_v25  ;;  %v699_v34 = vmul.f32 %v694_v45, %v677_v26 }
 0x10c   : > { %v700_v35 = vmul.f32 %v694_v45, %v678_v27  ;;  %v701_v36 = vmul.f32 %v694_v45, %v679_v28  ;;  %v702_v37 = vmul.f32 %v694_v45, %v680_v29  ;;  %v703_v39 = vmul.f32 %v694_v45, %v681_v30 }
 0x10d   : > { %v712_v12 = vrot.slane %v697_v32, 7  ;;  %v714_v46 = vrot.slane %v698_v33, 6  ;;  %v716_v47 = vrot.slane %v699_v34, 5  ;;  %v731_v38 = vrot.slane %v674_v22, %v2886_v41  ;;  %v3017_v22 = vld [vmem:[%s2812_s13 + $0x10] sm:$0xff] }
 0x10e   : > { %v718_v40 = vrot.slane %v700_v35, 4  ;;  %v720_v42 = vrot.slane %v701_v36, 3  ;;  %v722_v43 = vrot.slane %v702_v37, 2  ;;  %v724_v4 = vrot.slane %v703_v39, 1 }
 0x10f   : > { %v713_v48 = vsel %vm448_vm1, %v712_v12, %v696_v31  ;;  %v735_v49 = vrot.slane %v675_v23, %v2886_v41  ;;  %v739_v50 = vrot.slane %v676_v25, %v2886_v41  ;;  %v743_v51 = vrot.slane %v677_v26, %v2886_v41 }
 0x110   : > { %v715_v52 = vsel %vm450_vm2, %v714_v46, %v713_v48  ;;  %v747_v44 = vrot.slane %v678_v27, %v2886_v41  ;;  %v751_v53 = vrot.slane %v679_v28, %v2886_v41  ;;  %v755_v54 = vrot.slane %v680_v29, %v2886_v41 }
 0x111   : > { %v717_v55 = vsel %vm452_vm3, %v716_v47, %v715_v52  ;;  %v759_v56 = vrot.slane %v681_v30, %v2886_v41  ;;  %v760_v58 = vmul.f32 %v731_v38, %v2977_v60  ;;  %v761_v59 = vmul.f32 %v735_v49, %v2977_v60 }
 0x112   : > { %v719_v61 = vsel %vm454_vm4, %v718_v40, %v717_v55  ;;  %v762_v13 = vmul.f32 %v739_v50, %v2977_v60  ;;  %v763_v14 = vmul.f32 %v743_v51, %v2977_v60  ;;  %v764_v16 = vmul.f32 %v747_v44, %v2977_v60 }
 0x113   : > { %v721_v62 = vsel %vm456_vm5, %v720_v42, %v719_v61  ;;  %v765_v63 = vmul.f32 %v751_v53, %v2977_v60  ;;  %v766_v0 = vmul.f32 %v755_v54, %v2977_v60  ;;  %v767_v1 = vmul.f32 %v759_v56, %v2977_v60 }
 0x114   : > { %v723_v2 = vsel %vm458_vm6, %v722_v43, %v721_v62  ;;  %v768_v3 = vsub.f32 %v2929_v5, %v760_v58  ;;  %v769_v15 = vsub.f32 %v2932_v6, %v761_v59  ;;  %v770_v17 = vsub.f32 %v2935_v7, %v762_v13 }
 0x115   : > { %v725_v18 = vsel %vm460_vm7, %v724_v4, %v723_v2  ;;  %v771_v19 = vsub.f32 %v2938_v8, %v763_v14  ;;  %v772_v45 = vsub.f32 %v2941_v9, %v764_v16  ;;  %v773_v20 = vsub.f32 %v2944_v57, %v765_v63 }
 0x116   : > { %v3020_v60 = vadd.f32 %v725_v18, %v2924_v24  ;;  %v774_v23 = vsub.f32 %v2947_v10, %v766_v0  ;;  %v775_v5 = vsub.f32 %v2950_v11, %v767_v1  ;;  %v3025_v6 = vmul.f32 %v2985_v21, %v768_v3 }
 0x117   : > { %v3028_v7 = vmul.f32 %v2985_v21, %v769_v15  ;;  %v3031_v8 = vmul.f32 %v2985_v21, %v770_v17  ;;  %v3034_v9 = vmul.f32 %v2985_v21, %v771_v19  ;;  %v3037_v57 = vmul.f32 %v2985_v21, %v772_v45 }
 0x118   : > { %v3040_v24 = vmul.f32 %v2985_v21, %v773_v20  ;;  %v3043_v10 = vmul.f32 %v2985_v21, %v774_v23  ;;  %v3046_v11 = vmul.f32 %v2985_v21, %v775_v5  ;;  %v794_v25 = vmul.f32 %v3017_v22, %v3025_v6 }
 0x119   : > { %v795_v26 = vmul.f32 %v3017_v22, %v3028_v7  ;;  %v796_v27 = vmul.f32 %v3017_v22, %v3031_v8  ;;  %v797_v28 = vmul.f32 %v3017_v22, %v3034_v9  ;;  %v798_v29 = vmul.f32 %v3017_v22, %v3037_v57 }
 0x11a   : > { %v799_v30 = vmul.f32 %v3017_v22, %v3040_v24  ;;  %v800_v21 = vmul.f32 %v3017_v22, %v3043_v10  ;;  %v801_v31 = vmul.f32 %v3017_v22, %v3046_v11  ;;  %v802_v32 = vrot.slane %v794_v25, 4 }
 0x11b   : > { %v808_v33 = vrot.slane %v795_v26, 4  ;;  %v814_v34 = vrot.slane %v796_v27, 4  ;;  %v820_v35 = vrot.slane %v797_v28, 4  ;;  %v826_v36 = vrot.slane %v798_v29, 4 }
 0x11c   : > { %v803_v37 = vadd.f32 %v802_v32, %v794_v25  ;;  %v832_v39 = vrot.slane %v799_v30, 4  ;;  %v838_v12 = vrot.slane %v800_v21, 4  ;;  %v844_v46 = vrot.slane %v801_v31, 4 }
 0x11d   : > { %v809_v47 = vadd.f32 %v808_v33, %v795_v26  ;;  %v815_v38 = vadd.f32 %v814_v34, %v796_v27  ;;  %v821_v40 = vadd.f32 %v820_v35, %v797_v28  ;;  %v827_v42 = vadd.f32 %v826_v36, %v798_v29 }
 0x11e   : > { %v804_v43 = vrot.slane %v803_v37, 2  ;;  %v833_v4 = vadd.f32 %v832_v39, %v799_v30  ;;  %v839_v48 = vadd.f32 %v838_v12, %v800_v21  ;;  %v845_v49 = vadd.f32 %v844_v46, %v801_v31 }
 0x11f   : > { %v810_v50 = vrot.slane %v809_v47, 2  ;;  %v816_v51 = vrot.slane %v815_v38, 2  ;;  %v822_v52 = vrot.slane %v821_v40, 2  ;;  %v828_v44 = vrot.slane %v827_v42, 2 }
 0x120   : > { %v805_v53 = vadd.f32 %v804_v43, %v803_v37  ;;  %v834_v54 = vrot.slane %v833_v4, 2  ;;  %v840_v55 = vrot.slane %v839_v48, 2  ;;  %v846_v56 = vrot.slane %v845_v49, 2 }
 0x121   : > { %v811_v58 = vadd.f32 %v810_v50, %v809_v47  ;;  %v817_v59 = vadd.f32 %v816_v51, %v815_v38  ;;  %v823_v61 = vadd.f32 %v822_v52, %v821_v40  ;;  %v829_v13 = vadd.f32 %v828_v44, %v827_v42  ;;  %v2207_v51 = vld [vmem:[%s2820_s26 + $0x2] sm:$0x1] }
 0x122   : > { %v806_v14 = vrot.slane %v805_v53, 1  ;;  %v835_v16 = vadd.f32 %v834_v54, %v833_v4  ;;  %v841_v62 = vadd.f32 %v840_v55, %v839_v48  ;;  %v847_v63 = vadd.f32 %v846_v56, %v845_v49 }
 0x123   : > { %v812_v0 = vrot.slane %v811_v58, 1  ;;  %v818_v1 = vrot.slane %v817_v59, 1  ;;  %v824_v2 = vrot.slane %v823_v61, 1  ;;  %v830_v3 = vrot.slane %v829_v13, 1 }
 0x124   : > { %v807_v15 = vadd.f32 %v806_v14, %v805_v53  ;;  %v836_v17 = vrot.slane %v835_v16, 1  ;;  %v842_v18 = vrot.slane %v841_v62, 1  ;;  %v848_v23 = vrot.slane %v847_v63, 1 }
 0x125   : > { %v813_v19 = vadd.f32 %v812_v0, %v811_v58  ;;  %v819_v45 = vadd.f32 %v818_v1, %v817_v59  ;;  %v825_v20 = vadd.f32 %v824_v2, %v823_v61  ;;  %v831_v5 = vadd.f32 %v830_v3, %v829_v13 }
 0x126   : > { %v884_v25 = vmul.f32 %v3017_v22, %v3020_v60  ;;  %v837_v26 = vadd.f32 %v836_v17, %v835_v16  ;;  %v843_v28 = vadd.f32 %v842_v18, %v841_v62  ;;  %v849_v21 = vadd.f32 %v848_v23, %v847_v63 }
 0x127   : > { %v858_v27 = vsel %vm448_vm1, %v813_v19, %v807_v15  ;;  %v873_v48 = vstv %s788_s10  ;;  %v3081_v53 = vstv %s789_s9  ;;  %s2233_s10 = sshll.u32 %s2556_s21, 7  ;;  %s2023_s9 = sshll.u32 %s2826_s8, 4  ;;  %s3593_s9 = int_to_ptr.vmem [resolvable:$true] %s2023_s9 }
 0x128   : > { %v859_v29 = vsel %vm450_vm2, %v819_v45, %v858_v27  ;;  %v885_v30 = vrot.slane %v884_v25, 4  ;;  %s3591_s7 = scalar_lea.hbm %s3731_s4, %s2233_s10  ;;  %s2009_s21 = scalar_lea.sflag [#allocation5], %s2808_s11 }
 0x129   : > { %v860_v31 = vsel %vm452_vm3, %v825_v20, %v859_v29 }
 0x12a   : > { %v861_v32 = vsel %vm454_vm4, %v831_v5, %v860_v31  ;;  %v886_v33 = vadd.f32 %v885_v30, %v884_v25 }
 0x12b   : > { %v862_v34 = vsel %vm456_vm5, %v837_v26, %v861_v32 }
 0x12c   : > { %v863_v35 = vsel %vm458_vm6, %v843_v28, %v862_v34  ;;  %v887_v36 = vrot.slane %v886_v33, 2 }
 0x12d   : > { %v3073_v37 = vsel %vm460_vm7, %v849_v21, %v863_v35 }
 0x12e   : > { %v866_v39 = vmul.f32 %v3017_v22, %v3073_v37  ;;  %v888_v12 = vadd.f32 %v887_v36, %v886_v33 }
 0x130   : > { %v867_v46 = vrot.slane %v866_v39, 4  ;;  %v889_v47 = vrot.slane %v888_v12, 1 }
 0x132   : > { %v868_v38 = vadd.f32 %v867_v46, %v866_v39  ;;  %v890_v40 = vadd.f32 %v889_v47, %v888_v12 }
 0x134   : > { %v869_v42 = vrot.slane %v868_v38, 2  ;;  %2208 = vst [vmem:[%s2826_s8 + $0x2] sm:$0x1] %v890_v40  ;;  %v891_v52 = vsub.f32 %v2207_v51, %v890_v40 }
 0x136   : > { %v870_v43 = vadd.f32 %v869_v42, %v868_v38  ;;  %v896_v22 = vrot.slane %v891_v52, %v2886_v41 }
 0x138   : > { %v871_v4 = vrot.slane %v870_v43, 1 }
 0x13a   : > { %v872_v49 = vadd.f32 %v871_v4, %v870_v43 }
 0x13c   : > { %v874_v50 = vadd.f32 %v873_v48, %v872_v49 }
 0x13e   : > { %2340 = vrcp.f32 %v874_v50 }
 0x148   : > { %v2341_v44 = vpop.eup %2340 }
 0x149   : > { %v876_v54 = vmul.f32 %v2341_v44, %v807_v15  ;;  %v877_v55 = vmul.f32 %v2341_v44, %v813_v19  ;;  %v878_v56 = vmul.f32 %v2341_v44, %v819_v45  ;;  %v879_v58 = vmul.f32 %v2341_v44, %v825_v20 }
 0x14a   : > { %v880_v59 = vmul.f32 %v2341_v44, %v831_v5  ;;  %v881_v61 = vmul.f32 %v2341_v44, %v837_v26  ;;  %v882_v13 = vmul.f32 %v2341_v44, %v843_v28  ;;  %v883_v14 = vmul.f32 %v2341_v44, %v849_v21 }
 0x14b   : > { %v898_v16 = vmul.f32 %v896_v22, %v876_v54  ;;  %v899_v62 = vmul.f32 %v896_v22, %v877_v55  ;;  %v900_v63 = vmul.f32 %v896_v22, %v878_v56  ;;  %v901_v0 = vmul.f32 %v896_v22, %v879_v58 }
 0x14c   : > { %v902_v1 = vmul.f32 %v896_v22, %v880_v59  ;;  %v903_v2 = vmul.f32 %v896_v22, %v881_v61  ;;  %v904_v3 = vmul.f32 %v896_v22, %v882_v13  ;;  %v905_v17 = vmul.f32 %v896_v22, %v883_v14 }
 0x14d   : > { %v914_v18 = vrot.slane %v899_v62, 7  ;;  %v916_v23 = vrot.slane %v900_v63, 6  ;;  %v918_v25 = vrot.slane %v901_v0, 5  ;;  %v933_v15 = vrot.slane %v876_v54, %v2886_v41  ;;  %v3113_v54 = vld [vmem:[%s2812_s13 + $0x18] sm:$0xff] }
 0x14e   : > { %v920_v19 = vrot.slane %v902_v1, 4  ;;  %v922_v45 = vrot.slane %v903_v2, 3  ;;  %v924_v20 = vrot.slane %v904_v3, 2  ;;  %v926_v5 = vrot.slane %v905_v17, 1 }
 0x14f   : > { %v915_v26 = vsel %vm448_vm1, %v914_v18, %v898_v16  ;;  %v937_v27 = vrot.slane %v877_v55, %v2886_v41  ;;  %v941_v28 = vrot.slane %v878_v56, %v2886_v41  ;;  %v945_v29 = vrot.slane %v879_v58, %v2886_v41 }
 0x150   : > { %v917_v30 = vsel %vm450_vm2, %v916_v23, %v915_v26  ;;  %v949_v21 = vrot.slane %v880_v59, %v2886_v41  ;;  %v953_v31 = vrot.slane %v881_v61, %v2886_v41  ;;  %v957_v32 = vrot.slane %v882_v13, %v2886_v41 }
 0x151   : > { %v919_v33 = vsel %vm452_vm3, %v918_v25, %v917_v30  ;;  %v961_v34 = vrot.slane %v883_v14, %v2886_v41  ;;  %v962_v35 = vmul.f32 %v933_v15, %v3073_v37  ;;  %v963_v36 = vmul.f32 %v937_v27, %v3073_v37 }
 0x152   : > { %v921_v39 = vsel %vm454_vm4, %v920_v19, %v919_v33  ;;  %v964_v12 = vmul.f32 %v941_v28, %v3073_v37  ;;  %v965_v46 = vmul.f32 %v945_v29, %v3073_v37  ;;  %v966_v47 = vmul.f32 %v949_v21, %v3073_v37 }
 0x153   : > { %v923_v38 = vsel %vm456_vm5, %v922_v45, %v921_v39  ;;  %v967_v40 = vmul.f32 %v953_v31, %v3073_v37  ;;  %v968_v42 = vmul.f32 %v957_v32, %v3073_v37  ;;  %v969_v43 = vmul.f32 %v961_v34, %v3073_v37 }
 0x154   : > { %v925_v4 = vsel %vm458_vm6, %v924_v20, %v923_v38  ;;  %v970_v48 = vsub.f32 %v3025_v6, %v962_v35  ;;  %v971_v49 = vsub.f32 %v3028_v7, %v963_v36  ;;  %v972_v50 = vsub.f32 %v3031_v8, %v964_v12 }
 0x155   : > { %v927_v51 = vsel %vm460_vm7, %v926_v5, %v925_v4  ;;  %v973_v52 = vsub.f32 %v3034_v9, %v965_v46  ;;  %v974_v22 = vsub.f32 %v3037_v57, %v966_v47  ;;  %v975_v44 = vsub.f32 %v3040_v24, %v967_v40 }
 0x156   : > { %v3116_v37 = vadd.f32 %v927_v51, %v3020_v60  ;;  %v976_v55 = vsub.f32 %v3043_v10, %v968_v42  ;;  %v977_v6 = vsub.f32 %v3046_v11, %v969_v43  ;;  %v3121_v7 = vmul.f32 %v3081_v53, %v970_v48 }
 0x157   : > { %v3124_v8 = vmul.f32 %v3081_v53, %v971_v49  ;;  %v3127_v9 = vmul.f32 %v3081_v53, %v972_v50  ;;  %v3130_v57 = vmul.f32 %v3081_v53, %v973_v52  ;;  %v3133_v24 = vmul.f32 %v3081_v53, %v974_v22 }
 0x158   : > { %v3136_v60 = vmul.f32 %v3081_v53, %v975_v44  ;;  %v3139_v10 = vmul.f32 %v3081_v53, %v976_v55  ;;  %v3142_v11 = vmul.f32 %v3081_v53, %v977_v6  ;;  %v996_v56 = vmul.f32 %v3113_v54, %v3121_v7 }
 0x159   : > { %v997_v58 = vmul.f32 %v3113_v54, %v3124_v8  ;;  %v998_v59 = vmul.f32 %v3113_v54, %v3127_v9  ;;  %v999_v61 = vmul.f32 %v3113_v54, %v3130_v57  ;;  %v1000_v13 = vmul.f32 %v3113_v54, %v3133_v24 }
 0x15a   : > { %v1001_v14 = vmul.f32 %v3113_v54, %v3136_v60  ;;  %v1002_v53 = vmul.f32 %v3113_v54, %v3139_v10  ;;  %v1003_v16 = vmul.f32 %v3113_v54, %v3142_v11  ;;  %v1004_v62 = vrot.slane %v996_v56, 4 }
 0x15b   : > { %v1010_v63 = vrot.slane %v997_v58, 4  ;;  %v1016_v0 = vrot.slane %v998_v59, 4  ;;  %v1022_v1 = vrot.slane %v999_v61, 4  ;;  %v1028_v2 = vrot.slane %v1000_v13, 4 }
 0x15c   : > { %v1005_v3 = vadd.f32 %v1004_v62, %v996_v56  ;;  %v1034_v17 = vrot.slane %v1001_v14, 4  ;;  %v1040_v18 = vrot.slane %v1002_v53, 4  ;;  %v1046_v23 = vrot.slane %v1003_v16, 4 }
 0x15d   : > { %v1011_v25 = vadd.f32 %v1010_v63, %v997_v58  ;;  %v1017_v15 = vadd.f32 %v1016_v0, %v998_v59  ;;  %v1023_v19 = vadd.f32 %v1022_v1, %v999_v61  ;;  %v1029_v45 = vadd.f32 %v1028_v2, %v1000_v13 }
 0x15e   : > { %v1006_v20 = vrot.slane %v1005_v3, 2  ;;  %v1035_v5 = vadd.f32 %v1034_v17, %v1001_v14  ;;  %v1041_v26 = vadd.f32 %v1040_v18, %v1002_v53  ;;  %v1047_v27 = vadd.f32 %v1046_v23, %v1003_v16 }
 0x15f   : > { %v1012_v28 = vrot.slane %v1011_v25, 2  ;;  %v1018_v29 = vrot.slane %v1017_v15, 2  ;;  %v1024_v30 = vrot.slane %v1023_v19, 2  ;;  %v1030_v21 = vrot.slane %v1029_v45, 2 }
 0x160   : > { %v1007_v31 = vadd.f32 %v1006_v20, %v1005_v3  ;;  %v1036_v32 = vrot.slane %v1035_v5, 2  ;;  %v1042_v33 = vrot.slane %v1041_v26, 2  ;;  %v1048_v34 = vrot.slane %v1047_v27, 2 }
 0x161   : > { %v1013_v35 = vadd.f32 %v1012_v28, %v1011_v25  ;;  %v1019_v36 = vadd.f32 %v1018_v29, %v1017_v15  ;;  %v1025_v39 = vadd.f32 %v1024_v30, %v1023_v19  ;;  %v1031_v12 = vadd.f32 %v1030_v21, %v1029_v45  ;;  %v2210_v29 = vld [vmem:[%s2820_s26 + $0x3] sm:$0x1] }
 0x162   : > { %v1008_v46 = vrot.slane %v1007_v31, 1  ;;  %v1037_v47 = vadd.f32 %v1036_v32, %v1035_v5  ;;  %v1043_v38 = vadd.f32 %v1042_v33, %v1041_v26  ;;  %v1049_v40 = vadd.f32 %v1048_v34, %v1047_v27 }
 0x163   : > { %v1014_v42 = vrot.slane %v1013_v35, 1  ;;  %v1020_v43 = vrot.slane %v1019_v36, 1  ;;  %v1026_v4 = vrot.slane %v1025_v39, 1  ;;  %v1032_v48 = vrot.slane %v1031_v12, 1 }
 0x164   : > { %v1009_v49 = vadd.f32 %v1008_v46, %v1007_v31  ;;  %v1038_v50 = vrot.slane %v1037_v47, 1  ;;  %v1044_v51 = vrot.slane %v1043_v38, 1  ;;  %v1050_v55 = vrot.slane %v1049_v40, 1 }
 0x165   : > { %v1015_v52 = vadd.f32 %v1014_v42, %v1013_v35  ;;  %v1021_v22 = vadd.f32 %v1020_v43, %v1019_v36  ;;  %v1027_v44 = vadd.f32 %v1026_v4, %v1025_v39  ;;  %v1033_v6 = vadd.f32 %v1032_v48, %v1031_v12 }
 0x166   : > { %v1086_v56 = vmul.f32 %v3113_v54, %v3116_v37  ;;  %v1039_v58 = vadd.f32 %v1038_v50, %v1037_v47  ;;  %v1045_v61 = vadd.f32 %v1044_v51, %v1043_v38  ;;  %v1051_v53 = vadd.f32 %v1050_v55, %v1049_v40 }
 0x167   : > { %v1060_v59 = vsel %vm448_vm1, %v1015_v52, %v1009_v49  ;;  %v1075_v26 = vstv %s990_s17  ;;  %v3177_v31 = vstv %s991_s2 }
 0x168   : > { %v1061_v13 = vsel %vm450_vm2, %v1021_v22, %v1060_v59  ;;  %v1087_v14 = vrot.slane %v1086_v56, 4 }
 0x169   : > { %v1062_v16 = vsel %vm452_vm3, %v1027_v44, %v1061_v13 }
 0x16a   : > { %v1063_v62 = vsel %vm454_vm4, %v1033_v6, %v1062_v16  ;;  %v1088_v63 = vadd.f32 %v1087_v14, %v1086_v56 }
 0x16b   : > { %v1064_v0 = vsel %vm456_vm5, %v1039_v58, %v1063_v62 }
 0x16c   : > { %v1065_v1 = vsel %vm458_vm6, %v1045_v61, %v1064_v0  ;;  %v1089_v2 = vrot.slane %v1088_v63, 2 }
 0x16d   : > { %v3169_v3 = vsel %vm460_vm7, %v1051_v53, %v1065_v1 }
 0x16e   : > { %v1068_v17 = vmul.f32 %v3113_v54, %v3169_v3  ;;  %v1090_v18 = vadd.f32 %v1089_v2, %v1088_v63 }
 0x170   : > { %v1069_v23 = vrot.slane %v1068_v17, 4  ;;  %v1091_v25 = vrot.slane %v1090_v18, 1 }
 0x172   : > { %v1070_v15 = vadd.f32 %v1069_v23, %v1068_v17  ;;  %v1092_v19 = vadd.f32 %v1091_v25, %v1090_v18 }
 0x174   : > { %v1071_v45 = vrot.slane %v1070_v15, 2  ;;  %2211 = vst [vmem:[%s2826_s8 + $0x3] sm:$0x1] %v1092_v19  ;;  %v1093_v30 = vsub.f32 %v2210_v29, %v1092_v19 }
 0x176   : > { %v1072_v20 = vadd.f32 %v1071_v45, %v1070_v15  ;;  %v1098_v54 = vrot.slane %v1093_v30, %v2886_v41 }
 0x178   : > { %v1073_v5 = vrot.slane %v1072_v20, 1 }
 0x17a   : > { %v1074_v27 = vadd.f32 %v1073_v5, %v1072_v20 }
 0x17c   : > { %v1076_v28 = vadd.f32 %v1075_v26, %v1074_v27 }
 0x17e   : > { %2342 = vrcp.f32 %v1076_v28 }
 0x188   : > { %v2343_v21 = vpop.eup %2342 }
 0x189   : > { %v1078_v32 = vmul.f32 %v2343_v21, %v1009_v49  ;;  %v1079_v33 = vmul.f32 %v2343_v21, %v1015_v52  ;;  %v1080_v34 = vmul.f32 %v2343_v21, %v1021_v22  ;;  %v1081_v35 = vmul.f32 %v2343_v21, %v1027_v44 }
 0x18a   : > { %v1082_v36 = vmul.f32 %v2343_v21, %v1033_v6  ;;  %v1083_v39 = vmul.f32 %v2343_v21, %v1039_v58  ;;  %v1084_v12 = vmul.f32 %v2343_v21, %v1045_v61  ;;  %v1085_v46 = vmul.f32 %v2343_v21, %v1051_v53 }
 0x18b   : > { %v1100_v47 = vmul.f32 %v1098_v54, %v1078_v32  ;;  %v1101_v38 = vmul.f32 %v1098_v54, %v1079_v33  ;;  %v1102_v40 = vmul.f32 %v1098_v54, %v1080_v34  ;;  %v1103_v42 = vmul.f32 %v1098_v54, %v1081_v35 }
 0x18c   : > { %v1104_v43 = vmul.f32 %v1098_v54, %v1082_v36  ;;  %v1105_v4 = vmul.f32 %v1098_v54, %v1083_v39  ;;  %v1106_v48 = vmul.f32 %v1098_v54, %v1084_v12  ;;  %v1107_v50 = vmul.f32 %v1098_v54, %v1085_v46 }
 0x18d   : > { %v1116_v51 = vrot.slane %v1101_v38, 7  ;;  %v1118_v55 = vrot.slane %v1102_v40, 6  ;;  %v1120_v56 = vrot.slane %v1103_v42, 5  ;;  %v1135_v49 = vrot.slane %v1078_v32, %v2886_v41  ;;  %v3209_v32 = vld [vmem:[%s2812_s13 + $0x20] sm:$0xff] }
 0x18e   : > { %v1122_v52 = vrot.slane %v1104_v43, 4  ;;  %v1124_v22 = vrot.slane %v1105_v4, 3  ;;  %v1126_v44 = vrot.slane %v1106_v48, 2  ;;  %v1128_v6 = vrot.slane %v1107_v50, 1 }
 0x18f   : > { %v1117_v58 = vsel %vm448_vm1, %v1116_v51, %v1100_v47  ;;  %v1139_v59 = vrot.slane %v1079_v33, %v2886_v41  ;;  %v1143_v61 = vrot.slane %v1080_v34, %v2886_v41  ;;  %v1147_v13 = vrot.slane %v1081_v35, %v2886_v41 }
 0x190   : > { %v1119_v14 = vsel %vm450_vm2, %v1118_v55, %v1117_v58  ;;  %v1151_v53 = vrot.slane %v1082_v36, %v2886_v41  ;;  %v1155_v16 = vrot.slane %v1083_v39, %v2886_v41  ;;  %v1159_v62 = vrot.slane %v1084_v12, %v2886_v41 }
 0x191   : > { %v1121_v63 = vsel %vm452_vm3, %v1120_v56, %v1119_v14  ;;  %v1163_v0 = vrot.slane %v1085_v46, %v2886_v41  ;;  %v1164_v1 = vmul.f32 %v1135_v49, %v3169_v3  ;;  %v1165_v2 = vmul.f32 %v1139_v59, %v3169_v3 }
 0x192   : > { %v1123_v17 = vsel %vm454_vm4, %v1122_v52, %v1121_v63  ;;  %v1166_v18 = vmul.f32 %v1143_v61, %v3169_v3  ;;  %v1167_v23 = vmul.f32 %v1147_v13, %v3169_v3  ;;  %v1168_v25 = vmul.f32 %v1151_v53, %v3169_v3 }
 0x193   : > { %v1125_v15 = vsel %vm456_vm5, %v1124_v22, %v1123_v17  ;;  %v1169_v19 = vmul.f32 %v1155_v16, %v3169_v3  ;;  %v1170_v45 = vmul.f32 %v1159_v62, %v3169_v3  ;;  %v1171_v20 = vmul.f32 %v1163_v0, %v3169_v3 }
 0x194   : > { %v1127_v5 = vsel %vm458_vm6, %v1126_v44, %v1125_v15  ;;  %v1172_v26 = vsub.f32 %v3121_v7, %v1164_v1  ;;  %v1173_v27 = vsub.f32 %v3124_v8, %v1165_v2  ;;  %v1174_v28 = vsub.f32 %v3127_v9, %v1166_v18 }
 0x195   : > { %v1129_v29 = vsel %vm460_vm7, %v1128_v6, %v1127_v5  ;;  %v1175_v30 = vsub.f32 %v3130_v57, %v1167_v23  ;;  %v1176_v54 = vsub.f32 %v3133_v24, %v1168_v25  ;;  %v1177_v21 = vsub.f32 %v3136_v60, %v1169_v19 }
 0x196   : > { %v3212_v3 = vadd.f32 %v1129_v29, %v3116_v37  ;;  %v1178_v33 = vsub.f32 %v3139_v10, %v1170_v45  ;;  %v1179_v7 = vsub.f32 %v3142_v11, %v1171_v20  ;;  %v3217_v8 = vmul.f32 %v3177_v31, %v1172_v26 }
 0x197   : > { %v3220_v9 = vmul.f32 %v3177_v31, %v1173_v27  ;;  %v3223_v57 = vmul.f32 %v3177_v31, %v1174_v28  ;;  %v3226_v24 = vmul.f32 %v3177_v31, %v1175_v30  ;;  %v3229_v60 = vmul.f32 %v3177_v31, %v1176_v54 }
 0x198   : > { %v3232_v37 = vmul.f32 %v3177_v31, %v1177_v21  ;;  %v3235_v10 = vmul.f32 %v3177_v31, %v1178_v33  ;;  %v3238_v11 = vmul.f32 %v3177_v31, %v1179_v7  ;;  %v1198_v34 = vmul.f32 %v3209_v32, %v3217_v8 }
 0x199   : > { %v1199_v35 = vmul.f32 %v3209_v32, %v3220_v9  ;;  %v1200_v36 = vmul.f32 %v3209_v32, %v3223_v57  ;;  %v1201_v39 = vmul.f32 %v3209_v32, %v3226_v24  ;;  %v1202_v12 = vmul.f32 %v3209_v32, %v3229_v60 }
 0x19a   : > { %v1203_v46 = vmul.f32 %v3209_v32, %v3232_v37  ;;  %v1204_v31 = vmul.f32 %v3209_v32, %v3235_v10  ;;  %v1205_v47 = vmul.f32 %v3209_v32, %v3238_v11  ;;  %v1206_v38 = vrot.slane %v1198_v34, 4 }
 0x19b   : > { %v1212_v40 = vrot.slane %v1199_v35, 4  ;;  %v1218_v42 = vrot.slane %v1200_v36, 4  ;;  %v1224_v43 = vrot.slane %v1201_v39, 4  ;;  %v1230_v4 = vrot.slane %v1202_v12, 4 }
 0x19c   : > { %v1207_v48 = vadd.f32 %v1206_v38, %v1198_v34  ;;  %v1236_v50 = vrot.slane %v1203_v46, 4  ;;  %v1242_v51 = vrot.slane %v1204_v31, 4  ;;  %v1248_v55 = vrot.slane %v1205_v47, 4 }
 0x19d   : > { %v1213_v56 = vadd.f32 %v1212_v40, %v1199_v35  ;;  %v1219_v49 = vadd.f32 %v1218_v42, %v1200_v36  ;;  %v1225_v52 = vadd.f32 %v1224_v43, %v1201_v39  ;;  %v1231_v22 = vadd.f32 %v1230_v4, %v1202_v12 }
 0x19e   : > { %v1208_v44 = vrot.slane %v1207_v48, 2  ;;  %v1237_v6 = vadd.f32 %v1236_v50, %v1203_v46  ;;  %v1243_v58 = vadd.f32 %v1242_v51, %v1204_v31  ;;  %v1249_v59 = vadd.f32 %v1248_v55, %v1205_v47 }
 0x19f   : > { %v1214_v61 = vrot.slane %v1213_v56, 2  ;;  %v1220_v13 = vrot.slane %v1219_v49, 2  ;;  %v1226_v14 = vrot.slane %v1225_v52, 2  ;;  %v1232_v53 = vrot.slane %v1231_v22, 2 }
 0x1a0   : > { %v1209_v16 = vadd.f32 %v1208_v44, %v1207_v48  ;;  %v1238_v62 = vrot.slane %v1237_v6, 2  ;;  %v1244_v63 = vrot.slane %v1243_v58, 2  ;;  %v1250_v0 = vrot.slane %v1249_v59, 2 }
 0x1a1   : > { %v1215_v1 = vadd.f32 %v1214_v61, %v1213_v56  ;;  %v1221_v2 = vadd.f32 %v1220_v13, %v1219_v49  ;;  %v1227_v17 = vadd.f32 %v1226_v14, %v1225_v52  ;;  %v1233_v18 = vadd.f32 %v1232_v53, %v1231_v22  ;;  %v2213_v13 = vld [vmem:[%s2820_s26 + $0x4] sm:$0x1] }
 0x1a2   : > { %v1210_v23 = vrot.slane %v1209_v16, 1  ;;  %v1239_v25 = vadd.f32 %v1238_v62, %v1237_v6  ;;  %v1245_v15 = vadd.f32 %v1244_v63, %v1243_v58  ;;  %v1251_v19 = vadd.f32 %v1250_v0, %v1249_v59 }
 0x1a3   : > { %v1216_v45 = vrot.slane %v1215_v1, 1  ;;  %v1222_v20 = vrot.slane %v1221_v2, 1  ;;  %v1228_v5 = vrot.slane %v1227_v17, 1  ;;  %v1234_v26 = vrot.slane %v1233_v18, 1 }
 0x1a4   : > { %v1211_v27 = vadd.f32 %v1210_v23, %v1209_v16  ;;  %v1240_v28 = vrot.slane %v1239_v25, 1  ;;  %v1246_v29 = vrot.slane %v1245_v15, 1  ;;  %v1252_v33 = vrot.slane %v1251_v19, 1 }
 0x1a5   : > { %v1217_v30 = vadd.f32 %v1216_v45, %v1215_v1  ;;  %v1223_v54 = vadd.f32 %v1222_v20, %v1221_v2  ;;  %v1229_v21 = vadd.f32 %v1228_v5, %v1227_v17  ;;  %v1235_v7 = vadd.f32 %v1234_v26, %v1233_v18 }
 0x1a6   : > { %v1288_v34 = vmul.f32 %v3209_v32, %v3212_v3  ;;  %v1241_v35 = vadd.f32 %v1240_v28, %v1239_v25  ;;  %v1247_v39 = vadd.f32 %v1246_v29, %v1245_v15  ;;  %v1253_v31 = vadd.f32 %v1252_v33, %v1251_v19 }
 0x1a7   : > { %v1262_v36 = vsel %vm448_vm1, %v1217_v30, %v1211_v27  ;;  %v1277_v58 = vstv %s1192_s27  ;;  %v3273_v16 = vstv %s1193_s14  ;;  %s2440_s27 = scalar_lea.vmem %s3593_s9, 128  ;;  %s2575_s14 = smov [#allocation12]  }
 0x1a8   : > { %v1263_v12 = vsel %vm450_vm2, %v1223_v54, %v1262_v36  ;;  %v1289_v46 = vrot.slane %v1288_v34, 4  ;;  %p2441_p5 = scmp.ne.s32.totalorder %s3593_s9, %s2440_s27  ;;  %s2444_s15 = sshll.u32 %s2575_s14, 4  ;;  %s2445_s15 = int_to_ptr.vmem [resolvable:$false] %s2444_s15 }
 0x1a9   : > { %v1264_v47 = vsel %vm452_vm3, %v1229_v21, %v1263_v12  ;;  %p2447_p6 = scmp.lt.s32.totalorder %s3593_s9, %s2445_s15 }
 0x1aa   : > { %v1265_v38 = vsel %vm454_vm4, %v1235_v7, %v1264_v47  ;;  %v1290_v40 = vadd.f32 %v1289_v46, %v1288_v34  ;;  %p2442_p9 = pnand %p2441_p5, %p3759_p7 }
 0x1ab   : > { %v1266_v42 = vsel %vm456_vm5, %v1241_v35, %v1265_v38 }
 0x1ac   : > { %v1267_v43 = vsel %vm458_vm6, %v1247_v39, %v1266_v42  ;;  %v1291_v4 = vrot.slane %v1290_v40, 2  ;;  %p2443_p2 = pneg %p2442_p9 }
 0x1ad   : > { %v3265_v48 = vsel %vm460_vm7, %v1253_v31, %v1267_v43 }
 0x1ae   : > { %v1270_v50 = vmul.f32 %v3209_v32, %v3265_v48  ;;  %v1292_v51 = vadd.f32 %v1291_v4, %v1290_v40 }
 0x1b0   : > { %v1271_v55 = vrot.slane %v1270_v50, 4  ;;  %v1293_v56 = vrot.slane %v1292_v51, 1 }
 0x1b2   : > { %v1272_v49 = vadd.f32 %v1271_v55, %v1270_v50  ;;  %v1294_v52 = vadd.f32 %v1293_v56, %v1292_v51 }
 0x1b4   : > { %v1273_v22 = vrot.slane %v1272_v49, 2  ;;  %2214 = vst [vmem:[%s2826_s8 + $0x4] sm:$0x1] %v1294_v52  ;;  %v1295_v14 = vsub.f32 %v2213_v13, %v1294_v52 }
 0x1b6   : > { %v1274_v44 = vadd.f32 %v1273_v22, %v1272_v49  ;;  %v1300_v32 = vrot.slane %v1295_v14, %v2886_v41 }
 0x1b8   : > { %v1275_v6 = vrot.slane %v1274_v44, 1 }
 0x1ba   : > { %v1276_v59 = vadd.f32 %v1275_v6, %v1274_v44 }
 0x1bc   : > { %v1278_v61 = vadd.f32 %v1277_v58, %v1276_v59 }
 0x1be   : > { %2344 = vrcp.f32 %v1278_v61 }
 0x1c8   : > { %v2345_v53 = vpop.eup %2344 }
 0x1c9   : > { %v1280_v62 = vmul.f32 %v2345_v53, %v1211_v27  ;;  %v1281_v63 = vmul.f32 %v2345_v53, %v1217_v30  ;;  %v1282_v0 = vmul.f32 %v2345_v53, %v1223_v54  ;;  %v1283_v1 = vmul.f32 %v2345_v53, %v1229_v21 }
 0x1ca   : > { %v1284_v2 = vmul.f32 %v2345_v53, %v1235_v7  ;;  %v1285_v17 = vmul.f32 %v2345_v53, %v1241_v35  ;;  %v1286_v18 = vmul.f32 %v2345_v53, %v1247_v39  ;;  %v1287_v23 = vmul.f32 %v2345_v53, %v1253_v31 }
 0x1cb   : > { %v1302_v25 = vmul.f32 %v1300_v32, %v1280_v62  ;;  %v1303_v15 = vmul.f32 %v1300_v32, %v1281_v63  ;;  %v1304_v19 = vmul.f32 %v1300_v32, %v1282_v0  ;;  %v1305_v45 = vmul.f32 %v1300_v32, %v1283_v1 }
 0x1cc   : > { %v1306_v20 = vmul.f32 %v1300_v32, %v1284_v2  ;;  %v1307_v5 = vmul.f32 %v1300_v32, %v1285_v17  ;;  %v1308_v26 = vmul.f32 %v1300_v32, %v1286_v18  ;;  %v1309_v28 = vmul.f32 %v1300_v32, %v1287_v23 }
 0x1cd   : > { %v1318_v29 = vrot.slane %v1303_v15, 7  ;;  %v1320_v33 = vrot.slane %v1304_v19, 6  ;;  %v1322_v34 = vrot.slane %v1305_v45, 5  ;;  %v1337_v27 = vrot.slane %v1280_v62, %v2886_v41  ;;  %v3305_v62 = vld [vmem:[%s2812_s13 + $0x28] sm:$0xff] }
 0x1ce   : > { %v1324_v30 = vrot.slane %v1306_v20, 4  ;;  %v1326_v54 = vrot.slane %v1307_v5, 3  ;;  %v1328_v21 = vrot.slane %v1308_v26, 2  ;;  %v1330_v7 = vrot.slane %v1309_v28, 1 }
 0x1cf   : > { %v1319_v35 = vsel %vm448_vm1, %v1318_v29, %v1302_v25  ;;  %v1341_v36 = vrot.slane %v1281_v63, %v2886_v41  ;;  %v1345_v39 = vrot.slane %v1282_v0, %v2886_v41  ;;  %v1349_v12 = vrot.slane %v1283_v1, %v2886_v41 }
 0x1d0   : > { %v1321_v46 = vsel %vm450_vm2, %v1320_v33, %v1319_v35  ;;  %v1353_v31 = vrot.slane %v1284_v2, %v2886_v41  ;;  %v1357_v47 = vrot.slane %v1285_v17, %v2886_v41  ;;  %v1361_v38 = vrot.slane %v1286_v18, %v2886_v41 }
 0x1d1   : > { %v1323_v40 = vsel %vm452_vm3, %v1322_v34, %v1321_v46  ;;  %v1365_v42 = vrot.slane %v1287_v23, %v2886_v41  ;;  %v1366_v43 = vmul.f32 %v1337_v27, %v3265_v48  ;;  %v1367_v4 = vmul.f32 %v1341_v36, %v3265_v48 }
 0x1d2   : > { %v1325_v50 = vsel %vm454_vm4, %v1324_v30, %v1323_v40  ;;  %v1368_v51 = vmul.f32 %v1345_v39, %v3265_v48  ;;  %v1369_v55 = vmul.f32 %v1349_v12, %v3265_v48  ;;  %v1370_v56 = vmul.f32 %v1353_v31, %v3265_v48 }
 0x1d3   : > { %v1327_v49 = vsel %vm456_vm5, %v1326_v54, %v1325_v50  ;;  %v1371_v52 = vmul.f32 %v1357_v47, %v3265_v48  ;;  %v1372_v22 = vmul.f32 %v1361_v38, %v3265_v48  ;;  %v1373_v44 = vmul.f32 %v1365_v42, %v3265_v48 }
 0x1d4   : > { %v1329_v6 = vsel %vm458_vm6, %v1328_v21, %v1327_v49  ;;  %v1374_v58 = vsub.f32 %v3217_v8, %v1366_v43  ;;  %v1375_v59 = vsub.f32 %v3220_v9, %v1367_v4  ;;  %v1376_v61 = vsub.f32 %v3223_v57, %v1368_v51 }
 0x1d5   : > { %v1331_v13 = vsel %vm460_vm7, %v1330_v7, %v1329_v6  ;;  %v1377_v14 = vsub.f32 %v3226_v24, %v1369_v55  ;;  %v1378_v32 = vsub.f32 %v3229_v60, %v1370_v56  ;;  %v1379_v53 = vsub.f32 %v3232_v37, %v1371_v52 }
 0x1d6   : > { %v3308_v48 = vadd.f32 %v1331_v13, %v3212_v3  ;;  %v1380_v63 = vsub.f32 %v3235_v10, %v1372_v22  ;;  %v1381_v8 = vsub.f32 %v3238_v11, %v1373_v44  ;;  %v3313_v9 = vmul.f32 %v3273_v16, %v1374_v58 }
 0x1d7   : > { %v3316_v57 = vmul.f32 %v3273_v16, %v1375_v59  ;;  %v3319_v24 = vmul.f32 %v3273_v16, %v1376_v61  ;;  %v3322_v60 = vmul.f32 %v3273_v16, %v1377_v14  ;;  %v3325_v37 = vmul.f32 %v3273_v16, %v1378_v32 }
 0x1d8   : > { %v3328_v3 = vmul.f32 %v3273_v16, %v1379_v53  ;;  %v3331_v10 = vmul.f32 %v3273_v16, %v1380_v63  ;;  %v3334_v11 = vmul.f32 %v3273_v16, %v1381_v8  ;;  %v1400_v0 = vmul.f32 %v3305_v62, %v3313_v9 }
 0x1d9   : > { %v1401_v1 = vmul.f32 %v3305_v62, %v3316_v57  ;;  %v1402_v2 = vmul.f32 %v3305_v62, %v3319_v24  ;;  %v1403_v17 = vmul.f32 %v3305_v62, %v3322_v60  ;;  %v1404_v18 = vmul.f32 %v3305_v62, %v3325_v37 }
 0x1da   : > { %v1405_v23 = vmul.f32 %v3305_v62, %v3328_v3  ;;  %v1406_v16 = vmul.f32 %v3305_v62, %v3331_v10  ;;  %v1407_v25 = vmul.f32 %v3305_v62, %v3334_v11  ;;  %v1408_v15 = vrot.slane %v1400_v0, 4 }
 0x1db   : > { %v1414_v19 = vrot.slane %v1401_v1, 4  ;;  %v1420_v45 = vrot.slane %v1402_v2, 4  ;;  %v1426_v20 = vrot.slane %v1403_v17, 4  ;;  %v1432_v5 = vrot.slane %v1404_v18, 4 }
 0x1dc   : > { %v1409_v26 = vadd.f32 %v1408_v15, %v1400_v0  ;;  %v1438_v28 = vrot.slane %v1405_v23, 4  ;;  %v1444_v29 = vrot.slane %v1406_v16, 4  ;;  %v1450_v33 = vrot.slane %v1407_v25, 4 }
 0x1dd   : > { %v1415_v34 = vadd.f32 %v1414_v19, %v1401_v1  ;;  %v1421_v27 = vadd.f32 %v1420_v45, %v1402_v2  ;;  %v1427_v30 = vadd.f32 %v1426_v20, %v1403_v17  ;;  %v1433_v54 = vadd.f32 %v1432_v5, %v1404_v18 }
 0x1de   : > { %v1410_v21 = vrot.slane %v1409_v26, 2  ;;  %v1439_v7 = vadd.f32 %v1438_v28, %v1405_v23  ;;  %v1445_v35 = vadd.f32 %v1444_v29, %v1406_v16  ;;  %v1451_v36 = vadd.f32 %v1450_v33, %v1407_v25 }
 0x1df   : > { %v1416_v39 = vrot.slane %v1415_v34, 2  ;;  %v1422_v12 = vrot.slane %v1421_v27, 2  ;;  %v1428_v46 = vrot.slane %v1427_v30, 2  ;;  %v1434_v31 = vrot.slane %v1433_v54, 2 }
 0x1e0   : > { %v1411_v47 = vadd.f32 %v1410_v21, %v1409_v26  ;;  %v1440_v38 = vrot.slane %v1439_v7, 2  ;;  %v1446_v40 = vrot.slane %v1445_v35, 2  ;;  %v1452_v42 = vrot.slane %v1451_v36, 2 }
 0x1e1   : > { %v1417_v43 = vadd.f32 %v1416_v39, %v1415_v34  ;;  %v1423_v4 = vadd.f32 %v1422_v12, %v1421_v27  ;;  %v1429_v50 = vadd.f32 %v1428_v46, %v1427_v30  ;;  %v1435_v51 = vadd.f32 %v1434_v31, %v1433_v54  ;;  %v2216_v12 = vld [vmem:[%s2820_s26 + $0x5] sm:$0x1] }
 0x1e2   : > { %v1412_v55 = vrot.slane %v1411_v47, 1  ;;  %v1441_v56 = vadd.f32 %v1440_v38, %v1439_v7  ;;  %v1447_v49 = vadd.f32 %v1446_v40, %v1445_v35  ;;  %v1453_v52 = vadd.f32 %v1452_v42, %v1451_v36 }
 0x1e3   : > { %v1418_v22 = vrot.slane %v1417_v43, 1  ;;  %v1424_v44 = vrot.slane %v1423_v4, 1  ;;  %v1430_v6 = vrot.slane %v1429_v50, 1  ;;  %v1436_v58 = vrot.slane %v1435_v51, 1 }
 0x1e4   : > { %v1413_v59 = vadd.f32 %v1412_v55, %v1411_v47  ;;  %v1442_v61 = vrot.slane %v1441_v56, 1  ;;  %v1448_v13 = vrot.slane %v1447_v49, 1  ;;  %v1454_v63 = vrot.slane %v1453_v52, 1 }
 0x1e5   : > { %v1419_v14 = vadd.f32 %v1418_v22, %v1417_v43  ;;  %v1425_v32 = vadd.f32 %v1424_v44, %v1423_v4  ;;  %v1431_v53 = vadd.f32 %v1430_v6, %v1429_v50  ;;  %v1437_v8 = vadd.f32 %v1436_v58, %v1435_v51 }
 0x1e6   : > { %v1490_v0 = vmul.f32 %v3305_v62, %v3308_v48  ;;  %v1443_v1 = vadd.f32 %v1442_v61, %v1441_v56  ;;  %v1449_v17 = vadd.f32 %v1448_v13, %v1447_v49  ;;  %v1455_v16 = vadd.f32 %v1454_v63, %v1453_v52 }
 0x1e7   : > { %v1464_v2 = vsel %vm448_vm1, %v1419_v14, %v1413_v59  ;;  %v1479_v35 = vstv %s1394_s24  ;;  %v3369_v47 = vstv %s1395_s0  ;;  %s2446_s24 = scalar_lea.vmem %s2445_s15, 256 }
 0x1e8   : > { %v1465_v18 = vsel %vm450_vm2, %v1425_v32, %v1464_v2  ;;  %v1491_v23 = vrot.slane %v1490_v0, 4  ;;  %p2448_p1 = scmp.lt.s32.totalorder %s2446_s24, %s2440_s27 }
 0x1e9   : > { %v1466_v25 = vsel %vm452_vm3, %v1431_v53, %v1465_v18 }
 0x1ea   : > { %v1467_v15 = vsel %vm454_vm4, %v1437_v8, %v1466_v25  ;;  %v1492_v19 = vadd.f32 %v1491_v23, %v1490_v0  ;;  %p2449_p12 = por %p2448_p1, %p2447_p6 }
 0x1eb   : > { %v1468_v45 = vsel %vm456_vm5, %v1443_v1, %v1467_v15 }
 0x1ec   : > { %v1469_v20 = vsel %vm458_vm6, %v1449_v17, %v1468_v45  ;;  %v1493_v5 = vrot.slane %v1492_v19, 2  ;;  %p2450_p0 = pnand %p2449_p12, %p2443_p2 }
 0x1ed   : > { %v3361_v26 = vsel %vm460_vm7, %v1455_v16, %v1469_v20 }
 0x1ee   : > { %v1472_v28 = vmul.f32 %v3305_v62, %v3361_v26  ;;  %v1494_v29 = vadd.f32 %v1493_v5, %v1492_v19 }
 0x1f0   : > { %v1473_v33 = vrot.slane %v1472_v28, 4  ;;  %v1495_v34 = vrot.slane %v1494_v29, 1 }
 0x1f2   : > { %v1474_v27 = vadd.f32 %v1473_v33, %v1472_v28  ;;  %v1496_v30 = vadd.f32 %v1495_v34, %v1494_v29 }
 0x1f4   : > { %v1475_v54 = vrot.slane %v1474_v27, 2  ;;  %2217 = vst [vmem:[%s2826_s8 + $0x5] sm:$0x1] %v1496_v30  ;;  %v1497_v46 = vsub.f32 %v2216_v12, %v1496_v30 }
 0x1f6   : > { %v1476_v21 = vadd.f32 %v1475_v54, %v1474_v27  ;;  %v1502_v62 = vrot.slane %v1497_v46, %v2886_v41 }
 0x1f8   : > { %v1477_v7 = vrot.slane %v1476_v21, 1 }
 0x1fa   : > { %v1478_v36 = vadd.f32 %v1477_v7, %v1476_v21 }
 0x1fc   : > { %v1480_v39 = vadd.f32 %v1479_v35, %v1478_v36 }
 0x1fe   : > { %2346 = vrcp.f32 %v1480_v39 }
 0x208   : > { %v2347_v31 = vpop.eup %2346 }
 0x209   : > { %v1482_v38 = vmul.f32 %v2347_v31, %v1413_v59  ;;  %v1483_v40 = vmul.f32 %v2347_v31, %v1419_v14  ;;  %v1484_v42 = vmul.f32 %v2347_v31, %v1425_v32  ;;  %v1485_v43 = vmul.f32 %v2347_v31, %v1431_v53 }
 0x20a   : > { %v1486_v4 = vmul.f32 %v2347_v31, %v1437_v8  ;;  %v1487_v50 = vmul.f32 %v2347_v31, %v1443_v1  ;;  %v1488_v51 = vmul.f32 %v2347_v31, %v1449_v17  ;;  %v1489_v55 = vmul.f32 %v2347_v31, %v1455_v16 }
 0x20b   : > { %v1504_v56 = vmul.f32 %v1502_v62, %v1482_v38  ;;  %v1505_v49 = vmul.f32 %v1502_v62, %v1483_v40  ;;  %v1506_v52 = vmul.f32 %v1502_v62, %v1484_v42  ;;  %v1507_v22 = vmul.f32 %v1502_v62, %v1485_v43 }
 0x20c   : > { %v1508_v44 = vmul.f32 %v1502_v62, %v1486_v4  ;;  %v1509_v6 = vmul.f32 %v1502_v62, %v1487_v50  ;;  %v1510_v58 = vmul.f32 %v1502_v62, %v1488_v51  ;;  %v1511_v61 = vmul.f32 %v1502_v62, %v1489_v55 }
 0x20d   : > { %v1520_v13 = vrot.slane %v1505_v49, 7  ;;  %v1522_v63 = vrot.slane %v1506_v52, 6  ;;  %v1524_v0 = vrot.slane %v1507_v22, 5  ;;  %v1539_v59 = vrot.slane %v1482_v38, %v2886_v41  ;;  %v3401_v38 = vld [vmem:[%s2812_s13 + $0x30] sm:$0xff] }
 0x20e   : > { %v1526_v14 = vrot.slane %v1508_v44, 4  ;;  %v1528_v32 = vrot.slane %v1509_v6, 3  ;;  %v1530_v53 = vrot.slane %v1510_v58, 2  ;;  %v1532_v8 = vrot.slane %v1511_v61, 1 }
 0x20f   : > { %v1521_v1 = vsel %vm448_vm1, %v1520_v13, %v1504_v56  ;;  %v1543_v2 = vrot.slane %v1483_v40, %v2886_v41  ;;  %v1547_v17 = vrot.slane %v1484_v42, %v2886_v41  ;;  %v1551_v18 = vrot.slane %v1485_v43, %v2886_v41 }
 0x210   : > { %v1523_v23 = vsel %vm450_vm2, %v1522_v63, %v1521_v1  ;;  %v1555_v16 = vrot.slane %v1486_v4, %v2886_v41  ;;  %v1559_v25 = vrot.slane %v1487_v50, %v2886_v41  ;;  %v1563_v15 = vrot.slane %v1488_v51, %v2886_v41 }
 0x211   : > { %v1525_v19 = vsel %vm452_vm3, %v1524_v0, %v1523_v23  ;;  %v1567_v45 = vrot.slane %v1489_v55, %v2886_v41  ;;  %v1568_v20 = vmul.f32 %v1539_v59, %v3361_v26  ;;  %v1569_v5 = vmul.f32 %v1543_v2, %v3361_v26 }
 0x212   : > { %v1527_v28 = vsel %vm454_vm4, %v1526_v14, %v1525_v19  ;;  %v1570_v29 = vmul.f32 %v1547_v17, %v3361_v26  ;;  %v1571_v33 = vmul.f32 %v1551_v18, %v3361_v26  ;;  %v1572_v34 = vmul.f32 %v1555_v16, %v3361_v26 }
 0x213   : > { %v1529_v27 = vsel %vm456_vm5, %v1528_v32, %v1527_v28  ;;  %v1573_v30 = vmul.f32 %v1559_v25, %v3361_v26  ;;  %v1574_v54 = vmul.f32 %v1563_v15, %v3361_v26  ;;  %v1575_v21 = vmul.f32 %v1567_v45, %v3361_v26 }
 0x214   : > { %v1531_v7 = vsel %vm458_vm6, %v1530_v53, %v1529_v27  ;;  %v1576_v35 = vsub.f32 %v3313_v9, %v1568_v20  ;;  %v1577_v36 = vsub.f32 %v3316_v57, %v1569_v5  ;;  %v1578_v39 = vsub.f32 %v3319_v24, %v1570_v29 }
 0x215   : > { %v1533_v12 = vsel %vm460_vm7, %v1532_v8, %v1531_v7  ;;  %v1579_v46 = vsub.f32 %v3322_v60, %v1571_v33  ;;  %v1580_v62 = vsub.f32 %v3325_v37, %v1572_v34  ;;  %v1581_v31 = vsub.f32 %v3328_v3, %v1573_v30 }
 0x216   : > { %v3404_v26 = vadd.f32 %v1533_v12, %v3308_v48  ;;  %v1582_v40 = vsub.f32 %v3331_v10, %v1574_v54  ;;  %v1583_v9 = vsub.f32 %v3334_v11, %v1575_v21  ;;  %v3409_v57 = vmul.f32 %v3369_v47, %v1576_v35 }
 0x217   : > { %v3412_v24 = vmul.f32 %v3369_v47, %v1577_v36  ;;  %v3415_v60 = vmul.f32 %v3369_v47, %v1578_v39  ;;  %v3418_v37 = vmul.f32 %v3369_v47, %v1579_v46  ;;  %v3421_v3 = vmul.f32 %v3369_v47, %v1580_v62 }
 0x218   : > { %v3424_v48 = vmul.f32 %v3369_v47, %v1581_v31  ;;  %v3427_v10 = vmul.f32 %v3369_v47, %v1582_v40  ;;  %v3430_v11 = vmul.f32 %v3369_v47, %v1583_v9  ;;  %v1602_v42 = vmul.f32 %v3401_v38, %v3409_v57 }
 0x219   : > { %v1603_v43 = vmul.f32 %v3401_v38, %v3412_v24  ;;  %v1604_v4 = vmul.f32 %v3401_v38, %v3415_v60  ;;  %v1605_v50 = vmul.f32 %v3401_v38, %v3418_v37  ;;  %v1606_v51 = vmul.f32 %v3401_v38, %v3421_v3 }
 0x21a   : > { %v1607_v55 = vmul.f32 %v3401_v38, %v3424_v48  ;;  %v1608_v47 = vmul.f32 %v3401_v38, %v3427_v10  ;;  %v1609_v56 = vmul.f32 %v3401_v38, %v3430_v11  ;;  %v1610_v49 = vrot.slane %v1602_v42, 4 }
 0x21b   : > { %v1616_v52 = vrot.slane %v1603_v43, 4  ;;  %v1622_v22 = vrot.slane %v1604_v4, 4  ;;  %v1628_v44 = vrot.slane %v1605_v50, 4  ;;  %v1634_v6 = vrot.slane %v1606_v51, 4 }
 0x21c   : > { %v1611_v58 = vadd.f32 %v1610_v49, %v1602_v42  ;;  %v1640_v61 = vrot.slane %v1607_v55, 4  ;;  %v1646_v13 = vrot.slane %v1608_v47, 4  ;;  %v1652_v63 = vrot.slane %v1609_v56, 4 }
 0x21d   : > { %v1617_v0 = vadd.f32 %v1616_v52, %v1603_v43  ;;  %v1623_v59 = vadd.f32 %v1622_v22, %v1604_v4  ;;  %v1629_v14 = vadd.f32 %v1628_v44, %v1605_v50  ;;  %v1635_v32 = vadd.f32 %v1634_v6, %v1606_v51 }
 0x21e   : > { %v1612_v53 = vrot.slane %v1611_v58, 2  ;;  %v1641_v8 = vadd.f32 %v1640_v61, %v1607_v55  ;;  %v1647_v1 = vadd.f32 %v1646_v13, %v1608_v47  ;;  %v1653_v2 = vadd.f32 %v1652_v63, %v1609_v56 }
 0x21f   : > { %v1618_v17 = vrot.slane %v1617_v0, 2  ;;  %v1624_v18 = vrot.slane %v1623_v59, 2  ;;  %v1630_v23 = vrot.slane %v1629_v14, 2  ;;  %v1636_v16 = vrot.slane %v1635_v32, 2 }
 0x220   : > { %v1613_v25 = vadd.f32 %v1612_v53, %v1611_v58  ;;  %v1642_v15 = vrot.slane %v1641_v8, 2  ;;  %v1648_v19 = vrot.slane %v1647_v1, 2  ;;  %v1654_v45 = vrot.slane %v1653_v2, 2 }
 0x221   : > { %v1619_v20 = vadd.f32 %v1618_v17, %v1617_v0  ;;  %v1625_v5 = vadd.f32 %v1624_v18, %v1623_v59  ;;  %v1631_v28 = vadd.f32 %v1630_v23, %v1629_v14  ;;  %v1637_v29 = vadd.f32 %v1636_v16, %v1635_v32  ;;  %v2219_v18 = vld [vmem:[%s2820_s26 + $0x6] sm:$0x1] }
 0x222   : > { %v1614_v33 = vrot.slane %v1613_v25, 1  ;;  %v1643_v34 = vadd.f32 %v1642_v15, %v1641_v8  ;;  %v1649_v27 = vadd.f32 %v1648_v19, %v1647_v1  ;;  %v1655_v30 = vadd.f32 %v1654_v45, %v1653_v2 }
 0x223   : > { %v1620_v54 = vrot.slane %v1619_v20, 1  ;;  %v1626_v21 = vrot.slane %v1625_v5, 1  ;;  %v1632_v7 = vrot.slane %v1631_v28, 1  ;;  %v1638_v35 = vrot.slane %v1637_v29, 1 }
 0x224   : > { %v1615_v36 = vadd.f32 %v1614_v33, %v1613_v25  ;;  %v1644_v39 = vrot.slane %v1643_v34, 1  ;;  %v1650_v12 = vrot.slane %v1649_v27, 1  ;;  %v1656_v40 = vrot.slane %v1655_v30, 1 }
 0x225   : > { %v1621_v46 = vadd.f32 %v1620_v54, %v1619_v20  ;;  %v1627_v62 = vadd.f32 %v1626_v21, %v1625_v5  ;;  %v1633_v31 = vadd.f32 %v1632_v7, %v1631_v28  ;;  %v1639_v9 = vadd.f32 %v1638_v35, %v1637_v29 }
 0x226   : > { %v1692_v42 = vmul.f32 %v3401_v38, %v3404_v26  ;;  %v1645_v43 = vadd.f32 %v1644_v39, %v1643_v34  ;;  %v1651_v50 = vadd.f32 %v1650_v12, %v1649_v27  ;;  %v1657_v47 = vadd.f32 %v1656_v40, %v1655_v30 }
 0x227   : > { %v1666_v4 = vsel %vm448_vm1, %v1621_v46, %v1615_v36  ;;  %v1681_v1 = vstv %s1596_s25  ;;  %v3465_v25 = vstv %s1597_s12 }
 0x228   : > { %v1667_v51 = vsel %vm450_vm2, %v1627_v62, %v1666_v4  ;;  %v1693_v55 = vrot.slane %v1692_v42, 4 }
 0x229   : > { %v1668_v56 = vsel %vm452_vm3, %v1633_v31, %v1667_v51 }
 0x22a   : > { %v1669_v49 = vsel %vm454_vm4, %v1639_v9, %v1668_v56  ;;  %v1694_v52 = vadd.f32 %v1693_v55, %v1692_v42 }
 0x22b   : > { %v1670_v22 = vsel %vm456_vm5, %v1645_v43, %v1669_v49 }
 0x22c   : > { %v1671_v44 = vsel %vm458_vm6, %v1651_v50, %v1670_v22  ;;  %v1695_v6 = vrot.slane %v1694_v52, 2 }
 0x22d   : > { %v3457_v58 = vsel %vm460_vm7, %v1657_v47, %v1671_v44 }
 0x22e   : > { %v1674_v61 = vmul.f32 %v3401_v38, %v3457_v58  ;;  %v1696_v13 = vadd.f32 %v1695_v6, %v1694_v52 }
 0x230   : > { %v1675_v63 = vrot.slane %v1674_v61, 4  ;;  %v1697_v0 = vrot.slane %v1696_v13, 1 }
 0x232   : > { %v1676_v59 = vadd.f32 %v1675_v63, %v1674_v61  ;;  %v1698_v14 = vadd.f32 %v1697_v0, %v1696_v13 }
 0x234   : > { %v1677_v32 = vrot.slane %v1676_v59, 2  ;;  %2220 = vst [vmem:[%s2826_s8 + $0x6] sm:$0x1] %v1698_v14  ;;  %v1699_v23 = vsub.f32 %v2219_v18, %v1698_v14 }
 0x236   : > { %v1678_v53 = vadd.f32 %v1677_v32, %v1676_v59  ;;  %v1704_v38 = vrot.slane %v1699_v23, %v2886_v41 }
 0x238   : > { %v1679_v8 = vrot.slane %v1678_v53, 1 }
 0x23a   : > { %v1680_v2 = vadd.f32 %v1679_v8, %v1678_v53 }
 0x23c   : > { %v1682_v17 = vadd.f32 %v1681_v1, %v1680_v2 }
 0x23e   : > { %2348 = vrcp.f32 %v1682_v17 }
 0x248   : > { %v2349_v16 = vpop.eup %2348 }
 0x249   : > { %v1684_v15 = vmul.f32 %v2349_v16, %v1615_v36  ;;  %v1685_v19 = vmul.f32 %v2349_v16, %v1621_v46  ;;  %v1686_v45 = vmul.f32 %v2349_v16, %v1627_v62  ;;  %v1687_v20 = vmul.f32 %v2349_v16, %v1633_v31 }
 0x24a   : > { %v1688_v5 = vmul.f32 %v2349_v16, %v1639_v9  ;;  %v1689_v28 = vmul.f32 %v2349_v16, %v1645_v43  ;;  %v1690_v29 = vmul.f32 %v2349_v16, %v1651_v50  ;;  %v1691_v33 = vmul.f32 %v2349_v16, %v1657_v47 }
 0x24b   : > { %v1706_v34 = vmul.f32 %v1704_v38, %v1684_v15  ;;  %v1707_v27 = vmul.f32 %v1704_v38, %v1685_v19  ;;  %v1708_v30 = vmul.f32 %v1704_v38, %v1686_v45  ;;  %v1709_v54 = vmul.f32 %v1704_v38, %v1687_v20 }
 0x24c   : > { %v1710_v21 = vmul.f32 %v1704_v38, %v1688_v5  ;;  %v1711_v7 = vmul.f32 %v1704_v38, %v1689_v28  ;;  %v1712_v35 = vmul.f32 %v1704_v38, %v1690_v29  ;;  %v1713_v39 = vmul.f32 %v1704_v38, %v1691_v33 }
 0x24d   : > { %v1722_v12 = vrot.slane %v1707_v27, 7  ;;  %v1724_v40 = vrot.slane %v1708_v30, 6  ;;  %v1726_v42 = vrot.slane %v1709_v54, 5  ;;  %v1741_v36 = vrot.slane %v1684_v15, %v2886_v41  ;;  %v3497_v15 = vld [vmem:[%s2812_s13 + $0x38] sm:$0xff]  ;;  %s1797_s13 = sadd.s32 7, %s2878_s29 }
 0x24e   : > { %v1728_v46 = vrot.slane %v1710_v21, 4  ;;  %v1730_v62 = vrot.slane %v1711_v7, 3  ;;  %v1732_v31 = vrot.slane %v1712_v35, 2  ;;  %v1734_v9 = vrot.slane %v1713_v39, 1  ;;  %s3586_s16 = sld [smem:[#allocation3 + %s1797_s13]] }
 0x24f   : > { %v1723_v43 = vsel %vm448_vm1, %v1722_v12, %v1706_v34  ;;  %v1745_v4 = vrot.slane %v1685_v19, %v2886_v41  ;;  %v1749_v50 = vrot.slane %v1686_v45, %v2886_v41  ;;  %v1753_v51 = vrot.slane %v1687_v20, %v2886_v41 }
 0x250   : > { %v1725_v55 = vsel %vm450_vm2, %v1724_v40, %v1723_v43  ;;  %v1757_v47 = vrot.slane %v1688_v5, %v2886_v41  ;;  %v1761_v56 = vrot.slane %v1689_v28, %v2886_v41  ;;  %v1765_v49 = vrot.slane %v1690_v29, %v2886_v41 }
 0x251   : > { %v1727_v52 = vsel %vm452_vm3, %v1726_v42, %v1725_v55  ;;  %v1769_v22 = vrot.slane %v1691_v33, %v2886_v41  ;;  %v1770_v44 = vmul.f32 %v1741_v36, %v3457_v58  ;;  %v1771_v6 = vmul.f32 %v1745_v4, %v3457_v58 }
 0x252   : > { %v1729_v61 = vsel %vm454_vm4, %v1728_v46, %v1727_v52  ;;  %v1772_v13 = vmul.f32 %v1749_v50, %v3457_v58  ;;  %v1773_v63 = vmul.f32 %v1753_v51, %v3457_v58  ;;  %v1774_v0 = vmul.f32 %v1757_v47, %v3457_v58 }
 0x253   : > { %v1731_v59 = vsel %vm456_vm5, %v1730_v62, %v1729_v61  ;;  %v1775_v14 = vmul.f32 %v1761_v56, %v3457_v58  ;;  %v1776_v32 = vmul.f32 %v1765_v49, %v3457_v58  ;;  %v1777_v53 = vmul.f32 %v1769_v22, %v3457_v58 }
 0x254   : > { %v1733_v8 = vsel %vm458_vm6, %v1732_v31, %v1731_v59  ;;  %v1778_v1 = vsub.f32 %v3409_v57, %v1770_v44  ;;  %v1779_v2 = vsub.f32 %v3412_v24, %v1771_v6  ;;  %v1780_v17 = vsub.f32 %v3415_v60, %v1772_v13 }
 0x255   : > { %v1735_v18 = vsel %vm460_vm7, %v1734_v9, %v1733_v8  ;;  %v1781_v23 = vsub.f32 %v3418_v37, %v1773_v63  ;;  %v1782_v38 = vsub.f32 %v3421_v3, %v1774_v0  ;;  %v1783_v16 = vsub.f32 %v3424_v48, %v1775_v14 }
 0x256   : > { %v3500_v58 = vadd.f32 %v1735_v18, %v3404_v26  ;;  %v1784_v19 = vsub.f32 %v3427_v10, %v1776_v32  ;;  %v1785_v57 = vsub.f32 %v3430_v11, %v1777_v53  ;;  %v3505_v24 = vmul.f32 %v3465_v25, %v1778_v1 }
 0x257   : > { %v3508_v60 = vmul.f32 %v3465_v25, %v1779_v2  ;;  %v3511_v37 = vmul.f32 %v3465_v25, %v1780_v17  ;;  %v3514_v3 = vmul.f32 %v3465_v25, %v1781_v23  ;;  %v3517_v48 = vmul.f32 %v3465_v25, %v1782_v38 }
 0x258   : > { %v3520_v26 = vmul.f32 %v3465_v25, %v1783_v16  ;;  %v3523_v10 = vmul.f32 %v3465_v25, %v1784_v19  ;;  %v3526_v11 = vmul.f32 %v3465_v25, %v1785_v57  ;;  %v1804_v45 = vmul.f32 %v3497_v15, %v3505_v24 }
 0x259   : > { %v1805_v20 = vmul.f32 %v3497_v15, %v3508_v60  ;;  %v1806_v5 = vmul.f32 %v3497_v15, %v3511_v37  ;;  %v1807_v28 = vmul.f32 %v3497_v15, %v3514_v3  ;;  %v1808_v29 = vmul.f32 %v3497_v15, %v3517_v48 }
 0x25a   : > { %v1809_v33 = vmul.f32 %v3497_v15, %v3520_v26  ;;  %v1810_v25 = vmul.f32 %v3497_v15, %v3523_v10  ;;  %v1811_v34 = vmul.f32 %v3497_v15, %v3526_v11  ;;  %v1812_v27 = vrot.slane %v1804_v45, 4 }
 0x25b   : > { %v1818_v30 = vrot.slane %v1805_v20, 4  ;;  %v1824_v54 = vrot.slane %v1806_v5, 4  ;;  %v1830_v21 = vrot.slane %v1807_v28, 4  ;;  %v1836_v7 = vrot.slane %v1808_v29, 4 }
 0x25c   : > { %v1813_v35 = vadd.f32 %v1812_v27, %v1804_v45  ;;  %v1842_v39 = vrot.slane %v1809_v33, 4  ;;  %v1848_v12 = vrot.slane %v1810_v25, 4  ;;  %v1854_v40 = vrot.slane %v1811_v34, 4 }
 0x25d   : > { %v1819_v42 = vadd.f32 %v1818_v30, %v1805_v20  ;;  %v1825_v36 = vadd.f32 %v1824_v54, %v1806_v5  ;;  %v1831_v46 = vadd.f32 %v1830_v21, %v1807_v28  ;;  %v1837_v62 = vadd.f32 %v1836_v7, %v1808_v29 }
 0x25e   : > { %v1814_v31 = vrot.slane %v1813_v35, 2  ;;  %v1843_v9 = vadd.f32 %v1842_v39, %v1809_v33  ;;  %v1849_v43 = vadd.f32 %v1848_v12, %v1810_v25  ;;  %v1855_v4 = vadd.f32 %v1854_v40, %v1811_v34 }
 0x25f   : > { %v1820_v50 = vrot.slane %v1819_v42, 2  ;;  %v1826_v51 = vrot.slane %v1825_v36, 2  ;;  %v1832_v55 = vrot.slane %v1831_v46, 2  ;;  %v1838_v47 = vrot.slane %v1837_v62, 2 }
 0x260   : > { %v1815_v56 = vadd.f32 %v1814_v31, %v1813_v35  ;;  %v1844_v49 = vrot.slane %v1843_v9, 2  ;;  %v1850_v52 = vrot.slane %v1849_v43, 2  ;;  %v1856_v22 = vrot.slane %v1855_v4, 2 }
 0x261   : > { %v1821_v44 = vadd.f32 %v1820_v50, %v1819_v42  ;;  %v1827_v6 = vadd.f32 %v1826_v51, %v1825_v36  ;;  %v1833_v61 = vadd.f32 %v1832_v55, %v1831_v46  ;;  %v1839_v13 = vadd.f32 %v1838_v47, %v1837_v62 }
 0x262   : > { %v1816_v63 = vrot.slane %v1815_v56, 1  ;;  %v1845_v0 = vadd.f32 %v1844_v49, %v1843_v9  ;;  %v1851_v59 = vadd.f32 %v1850_v52, %v1849_v43  ;;  %v1857_v14 = vadd.f32 %v1856_v22, %v1855_v4 }
 0x263   : > { %v1822_v32 = vrot.slane %v1821_v44, 1  ;;  %v1828_v53 = vrot.slane %v1827_v6, 1  ;;  %v1834_v8 = vrot.slane %v1833_v61, 1  ;;  %v1840_v1 = vrot.slane %v1839_v13, 1 }
 0x264   : > { %v3544_v2 = vadd.f32 %v1816_v63, %v1815_v56  ;;  %v1846_v17 = vrot.slane %v1845_v0, 1  ;;  %v1852_v18 = vrot.slane %v1851_v59, 1  ;;  %v1858_v19 = vrot.slane %v1857_v14, 1 }
 0x265   : > { %v3546_v23 = vadd.f32 %v1822_v32, %v1821_v44  ;;  %v3548_v38 = vadd.f32 %v1828_v53, %v1827_v6  ;;  %v3550_v16 = vadd.f32 %v1834_v8, %v1833_v61  ;;  %v3552_v57 = vadd.f32 %v1840_v1, %v1839_v13 }
 0x266   : > { %v1894_v45 = vmul.f32 %v3497_v15, %v3500_v58  ;;  %v3556_v20 = vadd.f32 %v1846_v17, %v1845_v0  ;;  %v3561_v28 = vadd.f32 %v1852_v18, %v1851_v59  ;;  %v3565_v25 = vadd.f32 %v1858_v19, %v1857_v14 }
 0x267   : > { %v1868_v5 = vsel %vm448_vm1, %v3546_v23, %v3544_v2 }
 0x268   : > { %v1869_v29 = vsel %vm450_vm2, %v3548_v38, %v1868_v5  ;;  %v1895_v33 = vrot.slane %v1894_v45, 4 }
 0x269   : > { %v1870_v34 = vsel %vm452_vm3, %v3550_v16, %v1869_v29 }
 0x26a   : > { %v1871_v27 = vsel %vm454_vm4, %v3552_v57, %v1870_v34  ;;  %v1896_v30 = vadd.f32 %v1895_v33, %v1894_v45 }
 0x26b   : > { %v1872_v54 = vsel %vm456_vm5, %v3556_v20, %v1871_v27 }
 0x26c   : > { %v1873_v21 = vsel %vm458_vm6, %v3561_v28, %v1872_v54  ;;  %v1897_v7 = vrot.slane %v1896_v30, 2 }
 0x26d   : > { %v3578_v35 = vsel %vm460_vm7, %v3565_v25, %v1873_v21 }
 0x26e   : > { %v1876_v39 = vmul.f32 %v3497_v15, %v3578_v35  ;;  %v1898_v12 = vadd.f32 %v1897_v7, %v1896_v30 }
 0x270   : > { %v1877_v40 = vrot.slane %v1876_v39, 4  ;;  %v1899_v42 = vrot.slane %v1898_v12, 1 }
 0x272   : > { %v1878_v15 = vadd.f32 %v1877_v40, %v1876_v39  ;;  %v1900_v36 = vadd.f32 %v1899_v42, %v1898_v12 }
 0x274   : > { %v1879_v46 = vrot.slane %v1878_v15, 2  ;;  %2223 = vst [vmem:[%s2826_s8 + $0x7] sm:$0x1] %v1900_v36 }
 0x275   : > { %2453 = shalt.err (!%p2450_p0)
}
 0x276   : > { %s2454_s8 = scalar_lea.hbm %s3591_s7, 128  ;;  %s2458_s25 = scalar_lea.hbm %s3731_s4, 256 }
 0x277   : > { %p2455_p10 = scmp.ne.s32.totalorder %s3591_s7, %s2454_s8  ;;  %p2459_p8 = scmp.lt.u32.totalorder %s3591_s7, %s3731_s4 }
 0x278   : > { %p2460_p4 = scmp.lt.u32.totalorder %s2458_s25, %s2454_s8  ;;  %p2462_p5 = scmp.lt.u32.totalorder %s2454_s8, %s3591_s7 }
 0x279   : > { %p2456_p11 = pnand %p2455_p10, %p3759_p7 }
 0x27a   : > { %p2461_p13 = por %p2460_p4, %p2459_p8 }
 0x27b   : > { %p2457_p3 = pneg %p2456_p11 }
 0x27c   : > { %p2463_p9 = por %p2462_p5, %p2461_p13 }
 0x27e   : > { %p2464_p2 = pnand %p2463_p9, %p2457_p3 }
 0x280   : > { %2467 = shalt.err (!%p2464_p2)
}
 0x281   : > { %s2576_s17 = smov 16   ;;  %s2577_s2 = smov 1   ;;  %v1880_v62 = vadd.f32 %v1879_v46, %v1878_v15  ;;  %v1883_v9 = vstv %s3586_s16  ;;  %v2222_v50 = vld [vmem:[%s2820_s26 + $0x7] sm:$0x1] }
 0x282   : > { %2246 = dma.vmem_to_hbm [thread:$0]  (%p3759_p7), %s3593_s9, 128, %s3591_s7, %s2009_s21, %s2576_s17, %s2576_s17, %s2577_s2   ;;  %v1901_v51 = vsub.f32 %v2222_v50, %v1900_v36 }
 0x283   : > { %v1881_v31 = vrot.slane %v1880_v62, 1  ;;  %s1799_s27 = sld [smem:[#allocation8 + %s1797_s13]]  ;;  %s2578_s30 = smov [#allocation13]  }
 0x284   : > { %v1906_v55 = vrot.slane %v1901_v51, %v2886_v41  ;;  %s2039_s11 = sshll.u32 %s2578_s30, 4  ;;  %p3760_p6 = scmp.ne.s32.totalorder %s3744_s28, 0  ;;  %s3668_s11 = int_to_ptr.vmem [resolvable:$true] %s2039_s11 }
 0x285   : > { %v1882_v43 = vadd.f32 %v1881_v31, %v1880_v62  ;;  %s2468_s26 = scalar_lea.vmem %s3668_s11, 128  ;;  %p2475_p0 = scmp.lt.s32.totalorder %s3668_s11, %s3668_s11 }
 0x286   : > { %p2469_p7 = scmp.ne.s32.totalorder %s3668_s11, %s2468_s26  ;;  %p2476_p10 = scmp.lt.s32.totalorder %s2468_s26, %s2468_s26 }
 0x287   : > { %v1884_v4 = vadd.f32 %v1883_v9, %v1882_v43 }
 0x288   : > { %p2470_p1 = pnand %p2469_p7, %p3760_p6  ;;  %p2477_p11 = por %p2476_p10, %p2475_p0 }
 0x289   : > { %2350 = vrcp.f32 %v1884_v4  ;;  %v3625_v56 = vstv %s1799_s27 }
 0x28a   : > { %p2471_p12 = pneg %p2470_p1 }
 0x28c   : > { %p2478_p3 = pnand %p2477_p11, %p2471_p12 }
 0x293   : > { %v2351_v47 = vpop.eup %2350 }
 0x294   : > { %v1886_v49 = vmul.f32 %v2351_v47, %v3544_v2  ;;  %v1887_v52 = vmul.f32 %v2351_v47, %v3546_v23  ;;  %v1888_v22 = vmul.f32 %v2351_v47, %v3548_v38  ;;  %v1889_v44 = vmul.f32 %v2351_v47, %v3550_v16 }
 0x295   : > { %v1890_v6 = vmul.f32 %v2351_v47, %v3552_v57  ;;  %v1891_v61 = vmul.f32 %v2351_v47, %v3556_v20  ;;  %v1892_v13 = vmul.f32 %v2351_v47, %v3561_v28  ;;  %v1893_v63 = vmul.f32 %v2351_v47, %v3565_v25 }
 0x296   : > { %v1908_v0 = vmul.f32 %v1906_v55, %v1886_v49  ;;  %v1909_v59 = vmul.f32 %v1906_v55, %v1887_v52  ;;  %v1910_v14 = vmul.f32 %v1906_v55, %v1888_v22  ;;  %v1911_v32 = vmul.f32 %v1906_v55, %v1889_v44 }
 0x297   : > { %v1912_v53 = vmul.f32 %v1906_v55, %v1890_v6  ;;  %v1913_v8 = vmul.f32 %v1906_v55, %v1891_v61  ;;  %v1914_v1 = vmul.f32 %v1906_v55, %v1892_v13  ;;  %v1915_v2 = vmul.f32 %v1906_v55, %v1893_v63 }
 0x298   : > { %v1924_v17 = vrot.slane %v1909_v59, 7  ;;  %v1926_v18 = vrot.slane %v1910_v14, 6  ;;  %v1928_v23 = vrot.slane %v1911_v32, 5  ;;  %v1943_v38 = vrot.slane %v1886_v49, %v2886_v41 }
 0x299   : > { %v1930_v16 = vrot.slane %v1912_v53, 4  ;;  %v1932_v19 = vrot.slane %v1913_v8, 3  ;;  %v1934_v57 = vrot.slane %v1914_v1, 2  ;;  %v1936_v45 = vrot.slane %v1915_v2, 1 }
 0x29a   : > { %v1925_v20 = vsel %vm448_vm1, %v1924_v17, %v1908_v0  ;;  %v1947_v5 = vrot.slane %v1887_v52, %v2886_v41  ;;  %v1951_v28 = vrot.slane %v1888_v22, %v2886_v41  ;;  %v1955_v29 = vrot.slane %v1889_v44, %v2886_v41 }
 0x29b   : > { %v1927_v33 = vsel %vm450_vm2, %v1926_v18, %v1925_v20  ;;  %v1959_v25 = vrot.slane %v1890_v6, %v2886_v41  ;;  %v1963_v34 = vrot.slane %v1891_v61, %v2886_v41  ;;  %v1967_v27 = vrot.slane %v1892_v13, %v2886_v41 }
 0x29c   : > { %v1929_v30 = vsel %vm452_vm3, %v1928_v23, %v1927_v33  ;;  %v1971_v54 = vrot.slane %v1893_v63, %v2886_v41  ;;  %v1972_v21 = vmul.f32 %v1943_v38, %v3578_v35  ;;  %v1973_v7 = vmul.f32 %v1947_v5, %v3578_v35 }
 0x29d   : > { %v1931_v39 = vsel %vm454_vm4, %v1930_v16, %v1929_v30  ;;  %v1974_v12 = vmul.f32 %v1951_v28, %v3578_v35  ;;  %v1975_v40 = vmul.f32 %v1955_v29, %v3578_v35  ;;  %v1976_v42 = vmul.f32 %v1959_v25, %v3578_v35 }
 0x29e   : > { %v1933_v15 = vsel %vm456_vm5, %v1932_v19, %v1931_v39  ;;  %v1977_v36 = vmul.f32 %v1963_v34, %v3578_v35  ;;  %v1978_v46 = vmul.f32 %v1967_v27, %v3578_v35  ;;  %v1979_v41 = vmul.f32 %v1971_v54, %v3578_v35 }
 0x29f   : > { %v1935_v62 = vsel %vm458_vm6, %v1934_v57, %v1933_v15  ;;  %v1980_v31 = vsub.f32 %v3505_v24, %v1972_v21  ;;  %v1981_v9 = vsub.f32 %v3508_v60, %v1973_v7  ;;  %v1982_v43 = vsub.f32 %v3511_v37, %v1974_v12 }
 0x2a0   : > { %v1937_v4 = vsel %vm460_vm7, %v1936_v45, %v1935_v62  ;;  %v1983_v50 = vsub.f32 %v3514_v3, %v1975_v40  ;;  %v1984_v51 = vsub.f32 %v3517_v48, %v1976_v42  ;;  %v1985_v55 = vsub.f32 %v3520_v26, %v1977_v36 }
 0x2a1   : > { %v1939_v35 = vadd.f32 %v1937_v4, %v3500_v58  ;;  %v1986_v47 = vsub.f32 %v3523_v10, %v1978_v46  ;;  %v1987_v49 = vsub.f32 %v3526_v11, %v1979_v41  ;;  %v1989_v24 = vmul.f32 %v3625_v56, %v1980_v31 }
 0x2a2   : > { %v1990_v60 = vmul.f32 %v3625_v56, %v1981_v9  ;;  %v1991_v37 = vmul.f32 %v3625_v56, %v1982_v43  ;;  %v1992_v3 = vmul.f32 %v3625_v56, %v1983_v50  ;;  %v1993_v58 = vmul.f32 %v3625_v56, %v1984_v51 }
 0x2a3   : > { %v1994_v48 = vmul.f32 %v3625_v56, %v1985_v55  ;;  %v1995_v26 = vmul.f32 %v3625_v56, %v1986_v47  ;;  %v1996_v10 = vmul.f32 %v3625_v56, %v1987_v49  ;;  %1999 = vst [vmem:[#allocation13] sm:$0xff] %v1939_v35  ;;  %2000 = vst [vmem:[#allocation2] sm:$0xff] %v1989_v24 }
 0x2a4   : > { %2001 = vst [vmem:[#allocation2 + $0x8] sm:$0xff] %v1990_v60  ;;  %2002 = vst [vmem:[#allocation2 + $0x10] sm:$0xff] %v1991_v37 }
 0x2a5   : > { %2003 = vst [vmem:[#allocation2 + $0x18] sm:$0xff] %v1992_v3  ;;  %2004 = vst [vmem:[#allocation2 + $0x20] sm:$0xff] %v1993_v58 }
 0x2a6   : > { %2481 = shalt.err (!%p2478_p3)
}
 0x2a7   : > { %s2482_s9 = scalar_lea.hbm %s3732_s5, 128 }
 0x2a8   : > { %p2483_p8 = scmp.ne.s32.totalorder %s3732_s5, %s2482_s9  ;;  %p2488_p5 = scmp.lt.u32.totalorder %s2482_s9, %s3732_s5 }
 0x2aa   : > { %p2484_p4 = pnand %p2483_p8, %p3760_p6 }
 0x2ac   : > { %p2485_p13 = pneg %p2484_p4 }
 0x2ae   : > { %p2490_p9 = pnand %p2488_p5, %p2485_p13 }
 0x2b0   : > { %2493 = shalt.err (!%p2490_p9)
}
 0x2b1   : > { %2248 = dma.vmem_to_hbm [thread:$0]  (%p3760_p6), %s3668_s11, 128, %s3732_s5, [#allocation14]   ;;  %2005 = vst [vmem:[#allocation2 + $0x28] sm:$0xff] %v1994_v48  ;;  %2006 = vst [vmem:[#allocation2 + $0x30] sm:$0xff] %v1995_v26 }
 0x2b2   : > { %2007 = vst [vmem:[#allocation2 + $0x38] sm:$0xff] %v1996_v10 }
 0x2b3   : > { %2535 = dma.done.wait (%p3760_p6), [#allocation14], 128  }
 0x2b4   : > { %2537 = vsyncadd (%p3760_p6), [#allocation14], 4294967168 }
 0x2b5 PF: > { %s2055_s8 = sand.u32 1, %s2544_s18   ;;  %p3761_p2 = scmp.ne.s32.totalorder %s3747_s6, 0 }
 0x2b6   : > { %p3762_p7 = scmp.ge.s32.totalorder %s2564_s23, 2  ;;  %s2056_s0 = scalar_lea.sflag [#allocation5], %s2055_s8 }
 0x2b8   : > { %p2267_p1 = pnand %p3762_p7, %p3761_p2 }
 0x2ba   : > { %2539 = dma.done.wait (!%p2267_p1), %s2056_s0, 128  }
 0x2bb   : > { %2541 = vsyncadd (!%p2267_p1), %s2056_s0, 4294967168  ;;  %s28_s23 = sadd.s32 1, %s2564_s23   ;;  %s3763_s1 = sld [smem:[#allocation22_spill]] }
 0x2bc   : > { %p25_p12 = scmp.ge.s32.totalorder %s28_s23, 4   ;;  %s3764_s28 = sld [smem:[#allocation21_spill]] }
 0x2bd   : > { %s3765_s18 = smov %s2548_s19  ;;  %s3766_s19 = smov %s2552_s20 }
 0x2be   : > { %s3768_s21 = smov %s2560_s22  ;;  %27 = sbr.rel (!%p25_p12) target bundleno = 15 (0xf), region = 145 }
 0x2c1   : > { %s3767_s20 = smov %s3763_s1 }
 0x2c2   : > { %s3769_s22 = smov %s3764_s28 }
 0x2c5   :  { %2061 = vsyncpa [#allocation4], 1 }
 0x2c6   :  { %2063 = vsyncpa [#allocation4 + $0x1], 1 }
 0x2c7   :  { %2064 = vsyncpa [#allocation11], 1 }
 0x2c8   :  { %2066 = vsyncpa [#allocation11 + $0x1], 1 }
 0x2c9   :  { %2067 = vsyncpa [#allocation5], 1 }
 0x2ca   :  { %2069 = vsyncpa [#allocation5 + $0x1], 1 }
 0x2cb   :  { %2070 = vsyncpa [#allocation14], 1 }
 0x2cc   :  { %2071 = vsyncpa [#allocation6], 1 }
 0x2cd   :  { %2073 = vsyncpa [#allocation6 + $0x1], 1 }
 0x2ce   :  { %2074 = vsyncpa [#allocation7], 1 }
 0x2cf   :  { %2076 = vsyncpa [#allocation7 + $0x1], 1 }

</bundles_post_ra>
